<compile_context>
chip_gen: v7x
topology: tpu7x:2x2x1
jax: 0.10.0
libtpu: 0.0.40
codegen_flags: <defaults>
</compile_context>

<pallas_src>
import functools

import jax
import jax.numpy as jnp
from jax.experimental import pallas as pl
from jax.experimental.pallas import tpu as pltpu


# --------------------------------------------------------------------------
# Kernel
# --------------------------------------------------------------------------
def _mlp_kernel(x_ref, wgu_ref, wd_ref, o_ref, acc_ref, *, block_i):
    """One (block_m, block_i) tile of the fused MLP.

    x_ref   : (block_m, hidden)
    wgu_ref : (hidden, 2*block_i)   packed as [gate_k | up_k]
    wd_ref  : (block_i, hidden)
    o_ref   : (block_m, hidden)     written on the last k step only
    acc_ref : (block_m, hidden) f32 VMEM down-proj accumulator
    """
    k = pl.program_id(1)

    @pl.when(k == 0)
    def _():
        acc_ref[...] = jnp.zeros_like(acc_ref)

    x = x_ref[...]

    # Single MXU matmul produces [gate | up] for this intermediate slice.
    gu = jnp.dot(x, wgu_ref[...], preferred_element_type=jnp.float32)
    gate = gu[:, :block_i]
    up = gu[:, block_i:]

    # SiLU(gate) * up in f32 on the VPU/EUP.
    hidden = (gate * jax.nn.sigmoid(gate)) * up

    # Partial down projection for this slice; accumulate in f32 scratch.
    acc_ref[...] += jnp.dot(hidden.astype(wd_ref.dtype), wd_ref[...],
                            preferred_element_type=jnp.float32)

    @pl.when(k == pl.num_programs(1) - 1)
    def _():
        o_ref[...] = acc_ref[...].astype(o_ref.dtype)


# --------------------------------------------------------------------------
# Tile / VMEM budgeting helpers
# --------------------------------------------------------------------------
def _round_up(x, m):
    return ((x + m - 1) // m) * m


def _tpu_vmem_bytes():
    """Per-core VMEM capacity; conservative 64 MiB fallback (safe on v7x)."""
    try:
        info = pltpu.get_tpu_info()
        v = getattr(info, "vmem_capacity_bytes", None)
        if v:
            return int(v)
    except Exception:
        pass
    return 64 * 1024 * 1024


def _choose_tiles(m, hidden, intermediate, x_bytes, w_bytes, out_bytes,
                  block_m=None, block_i=None):
    """Pick (block_m, block_i, vmem_limit) from the chip's VMEM capacity."""
    vmem_cap = _tpu_vmem_bytes()
    budget = int(vmem_cap * 0.85)
    pack = {4: 8, 2: 16, 1: 32}.get(x_bytes, 8)   # sublane pack of activations

    # --- intermediate tile: weight double-buffers get ~60% of the budget ---
    if block_i is None:
        w_budget = int(budget * 0.60)
        bi_cap = w_budget // (6 * hidden * w_bytes)        # 2*(2bi+bi)*H*wb
        bi_cap = max(128, min(bi_cap, max(intermediate, 128), 2048))
        bi_cap = (bi_cap // 128) * 128
        bi = bi_cap
        # Prefer a 128-multiple that divides `intermediate` (avoids padded
        # zero columns), but only if it costs at most 2x in tile size.
        if intermediate % 128 == 0:
            cand = bi_cap
            while cand >= max(128, bi_cap // 2):
                if intermediate % cand == 0:
                    bi = cand
                    break
                cand -= 128
    else:
        bi = max(128, (int(block_i) // 128) * 128)

    # --- row tile: whatever activation budget remains -----------------------
    act_budget = budget - 6 * hidden * bi * w_bytes
    per_row = hidden * (2 * x_bytes + 2 * out_bytes + 4)    # x, out (x2), acc
    if act_budget > per_row * pack:
        bm_cap = (act_budget // per_row // pack) * pack
    else:
        bm_cap = pack
    if block_m is None:
        # ~1024 rows keeps large-VMEM chips (v5e/v6e) compute-bound; 512 on
        # 64 MiB-per-core chips (v7x, ridge ~311 FLOP/B).
        target = 1024 if vmem_cap >= (96 << 20) else 512
        bm = min(target, bm_cap, _round_up(m, pack))
    else:
        bm = min(_round_up(int(block_m), pack), _round_up(m, pack))
    bm = max(pack, (bm // pack) * pack)

    # --- VMEM limit from the chosen tiles -----------------------------------
    vmem_est = (2 * bm * hidden * x_bytes          # x tile (double-buffered)
                + 2 * hidden * (2 * bi) * w_bytes  # packed gate|up tile
                + 2 * bi * hidden * w_bytes        # w_down tile
                + 2 * bm * hidden * out_bytes      # output tile
                + bm * hidden * 4)                 # f32 accumulator
    vmem_limit = int(min(max(vmem_est * 1.25, 32 * 1024 * 1024),
                         vmem_cap * 0.92))
    vmem_limit = max(vmem_limit, int(vmem_est * 1.05))
    return bm, bi, vmem_limit


# --------------------------------------------------------------------------
# Weight packing (call ONCE at load time in production)
# --------------------------------------------------------------------------
def pack_llama_mlp_weights(w_gate, w_up, w_down, *, block_i):
    """Pack gate/up into one (hidden, 2*I_pad) array, per-tile [gate_k|up_k].

    Also zero-pads the intermediate dim to a multiple of block_i (padded
    columns/rows contribute exactly zero to the output), so the kernel's
    reduction grid is always exact.
    """
    hidden, intermediate = w_gate.shape
    i_pad = _round_up(intermediate, block_i)
    if i_pad != intermediate:
        p = i_pad - intermediate
        w_gate = jnp.pad(w_gate, ((0, 0), (0, p)))
        w_up = jnp.pad(w_up, ((0, 0), (0, p)))
        w_down = jnp.pad(w_down, ((0, p), (0, 0)))
    nk = i_pad // block_i
    w_gu = jnp.concatenate(
        [w_gate.reshape(hidden, nk, block_i),
         w_up.reshape(hidden, nk, block_i)],
        axis=-1).reshape(hidden, nk * 2 * block_i)
    return w_gu, w_down


# --------------------------------------------------------------------------
# Pallas call wrappers
# --------------------------------------------------------------------------
@functools.partial(jax.jit,
                   static_argnames=("block_m", "block_i", "vmem_limit"))
def llama_mlp_packed(x, w_gu, w_down, *, block_m, block_i, vmem_limit=None):
    """Fused MLP on pre-packed weights. x: (batch, seq, hidden)."""
    batch, seq, hidden = x.shape
    i_pad, hidden_d = w_down.shape
    assert hidden_d == hidden
    assert w_gu.shape == (hidden, 2 * i_pad)
    assert i_pad % block_i == 0

    m = batch * seq
    bm = block_m
    x2d = x.reshape(m, hidden)

    if vmem_limit is None:
        xb, wb = x.dtype.itemsize, w_gu.dtype.itemsize
        est = (2 * bm * hidden * xb + 6 * hidden * block_i * wb
               + 2 * bm * hidden * xb + bm * hidden * 4)
        vmem_limit = int(min(max(est * 1.25, 32 * 1024 * 1024),
                             _tpu_vmem_bytes() * 0.92))

    grid = (pl.cdiv(m, bm), i_pad // block_i)   # ragged last row block is OK

    out2d = pl.pallas_call(
        functools.partial(_mlp_kernel, block_i=block_i),
        out_shape=jax.ShapeDtypeStruct((m, hidden), x.dtype),
        grid=grid,
        in_specs=[
            pl.BlockSpec((bm, hidden), lambda i, k: (i, 0)),
            pl.BlockSpec((hidden, 2 * block_i), lambda i, k: (0, k)),
            pl.BlockSpec((block_i, hidden), lambda i, k: (k, 0)),
        ],
        out_specs=pl.BlockSpec((bm, hidden), lambda i, k: (i, 0)),
        scratch_shapes=[pltpu.VMEM((bm, hidden), jnp.float32)],
        compiler_params=pltpu.CompilerParams(
            dimension_semantics=("parallel", "arbitrary"),
            vmem_limit_bytes=int(vmem_limit),
        ),
    )(x2d, w_gu, w_down)

    return out2d.reshape(batch, seq, hidden)


def llama_mlp(x, w_gate, w_up, w_down, *, block_m=None, block_i=None):
    """Convenience wrapper: auto tile selection + per-call weight packing.

    Production code should call _choose_tiles / pack_llama_mlp_weights once
    at load time and then only llama_mlp_packed per step.
    """
    batch, seq, hidden = x.shape
    hidden_w, intermediate = w_gate.shape
    assert hidden_w == hidden
    assert w_up.shape == (hidden, intermediate)
    assert w_down.shape == (intermediate, hidden)

    m = batch * seq
    bm, bi, vmem_limit = _choose_tiles(
        m, hidden, intermediate,
        x.dtype.itemsize, w_gate.dtype.itemsize, x.dtype.itemsize,
        block_m=block_m, block_i=block_i)
    w_gu, w_down_p = pack_llama_mlp_weights(w_gate, w_up, w_down, block_i=bi)
    return llama_mlp_packed(x, w_gu, w_down_p,
                            block_m=bm, block_i=bi, vmem_limit=vmem_limit)


# --------------------------------------------------------------------------
# Reference + self-test
# --------------------------------------------------------------------------
def reference_mlp(x, w_gate, w_up, w_down):
    """Plain-JAX reference matching the PyTorch forward (tp == 1 path)."""
    g = jnp.einsum("bsh,hi->bsi", x, w_gate)
    u = jnp.einsum("bsh,hi->bsi", x, w_up)
    h = jax.nn.silu(g) * u
    return jnp.einsum("bsi,ih->bsh", h, w_down)


if __name__ == "__main__":
    # Small config consistent with LlamaMLP (hidden_act="silu", tp=1),
    # sized so the intermediate axis can actually be tiled.
    batch, seq = 2, 8
    hidden_size, intermediate_size = 256, 512

    key = jax.random.PRNGKey(0)
    kx, kg, ku, kd = jax.random.split(key, 4)

    x = jax.random.normal(kx, (batch, seq, hidden_size), dtype=jnp.float32)
    # Synthetic weights, stored already transposed (see layout note at top).
    w_gate = 0.02 * jax.random.normal(
        kg, (hidden_size, intermediate_size), dtype=jnp.float32)
    w_up = 0.02 * jax.random.normal(
        ku, (hidden_size, intermediate_size), dtype=jnp.float32)
    w_down = 0.02 * jax.random.normal(
        kd, (intermediate_size, hidden_size), dtype=jnp.float32)

    ref = reference_mlp(x, w_gate, w_up, w_down)

    # 1) Auto tile selection (VMEM-aware defaults), f32.
    out_auto = jax.block_until_ready(llama_mlp(x, w_gate, w_up, w_down))
    assert out_auto.shape == (batch, seq, hidden_size)
    assert jnp.allclose(out_auto, ref, atol=1e-5, rtol=1e-5), \
        "f32 (auto tiles) mismatch vs reference"

    # 2) Forced small tiles: block_i=256 -> two reduction steps, exercising
    #    the accumulate-then-finalize path; row tile shrinks to the tiny M.
    out_forced = jax.block_until_ready(
        llama_mlp(x, w_gate, w_up, w_down, block_m=128, block_i=256))
    assert jnp.allclose(out_forced, ref, atol=1e-5, rtol=1e-5), \
        "f32 (forced tiles) mismatch vs reference"

    # 3) bf16 weights/activations (intended production format), f32 accum.
    out_bf16 = jax.block_until_ready(
        llama_mlp(x.astype(jnp.bfloat16),
                  w_gate.astype(jnp.bfloat16),
                  w_up.astype(jnp.bfloat16),
                  w_down.astype(jnp.bfloat16),
                  block_m=128, block_i=256))
    assert jnp.allclose(out_bf16.astype(jnp.float32), ref,
                        atol=5e-2, rtol=5e-2), "bf16 mismatch vs reference"

    print("KERNEL_OK")
</pallas_src>

<mosaic_0001>
module attributes {stable_mosaic.version = 11 : i64} {
  func.func @_mlp_kernel(%arg0: i32, %arg1: i32, %arg2: memref<16x256xf32, #tpu.memory_space<vmem>>, %arg3: memref<256x1024xf32, #tpu.memory_space<vmem>>, %arg4: memref<512x256xf32, #tpu.memory_space<vmem>>, %arg5: memref<16x256xf32, #tpu.memory_space<vmem>>, %arg6: memref<16x256xf32, #tpu.memory_space<vmem>>) attributes {dimension_semantics = [#tpu.dimension_semantics<parallel>, #tpu.dimension_semantics<arbitrary>], iteration_bounds = array<i64: 1, 1>, scalar_prefetch = 0 : i64, scratch_operands = 1 : i64, tpu.core_type = #tpu.core_type<tc>, window_params = [{transform_indices = @transform_0, window_bounds = array<i64: 16, 256>}, {transform_indices = @transform_1, window_bounds = array<i64: 256, 1024>}, {transform_indices = @transform_2, window_bounds = array<i64: 512, 256>}, {transform_indices = @transform_3, window_bounds = array<i64: 16, 256>}]} {
    %c0_i32 = arith.constant 0 : i32
    %0 = arith.cmpi eq, %arg1, %c0_i32 : i32
    %1 = arith.extui %0 : i1 to i32
    %c0_i32_0 = arith.constant 0 : i32
    %2 = arith.cmpi ne, %1, %c0_i32_0 : i32
    scf.if %2 {
      %cst_14 = arith.constant 0.000000e+00 : f32
      %23 = vector.broadcast %cst_14 : f32 to vector<16x256xf32>
      %c0_15 = arith.constant 0 : index
      %c0_16 = arith.constant 0 : index
      %24 = vector.load %arg6[%c0_15, %c0_16] : memref<16x256xf32, #tpu.memory_space<vmem>>, vector<16x256xf32>
      tpu.vector_store %arg6[%c0_15, %c0_16], %23 {strides = array<i32>} : memref<16x256xf32, #tpu.memory_space<vmem>>, vector<16x256xf32>,
    } else {
    }
    %c0 = arith.constant 0 : index
    %c0_1 = arith.constant 0 : index
    %3 = vector.load %arg2[%c0, %c0_1] : memref<16x256xf32, #tpu.memory_space<vmem>>, vector<16x256xf32>
    %c0_2 = arith.constant 0 : index
    %c0_3 = arith.constant 0 : index
    %4 = vector.load %arg3[%c0_2, %c0_3] : memref<256x1024xf32, #tpu.memory_space<vmem>>, vector<256x1024xf32>
    %cst = arith.constant dense<0.000000e+00> : vector<16x1024xf32>
    %5 = tpu.matmul %3, %4, %cst {dimension_numbers = #tpu.dot_dimension_numbers<[1], [0], [0], [1], [0, 0, 1, 1], [], []>} : vector<16x256xf32>, vector<256x1024xf32>, vector<16x1024xf32> -> vector<16x1024xf32>
    %6 = vector.extract_strided_slice %5 {offsets = [0, 0], sizes = [16, 512], strides = [1, 1]} : vector<16x1024xf32> to vector<16x512xf32>
    %7 = vector.extract_strided_slice %5 {offsets = [0, 512], sizes = [16, 512], strides = [1, 1]} : vector<16x1024xf32> to vector<16x512xf32>
    %8 = arith.negf %6 : vector<16x512xf32>
    %9 = math.exp %8 : vector<16x512xf32>
    %cst_4 = arith.constant 1.000000e+00 : f32
    %10 = vector.broadcast %cst_4 : f32 to vector<16x512xf32>
    %11 = arith.addf %10, %9 : vector<16x512xf32>
    %12 = arith.divf %10, %11 : vector<16x512xf32>
    %13 = arith.mulf %6, %12 : vector<16x512xf32>
    %14 = arith.mulf %13, %7 : vector<16x512xf32>
    %c0_5 = arith.constant 0 : index
    %c0_6 = arith.constant 0 : index
    %15 = vector.load %arg6[%c0_5, %c0_6] : memref<16x256xf32, #tpu.memory_space<vmem>>, vector<16x256xf32>
    %c0_7 = arith.constant 0 : index
    %c0_8 = arith.constant 0 : index
    %16 = vector.load %arg4[%c0_7, %c0_8] : memref<512x256xf32, #tpu.memory_space<vmem>>, vector<512x256xf32>
    %cst_9 = arith.constant dense<0.000000e+00> : vector<16x256xf32>
    %17 = tpu.matmul %14, %16, %cst_9 {dimension_numbers = #tpu.dot_dimension_numbers<[1], [0], [0], [1], [0, 0, 1, 1], [], []>} : vector<16x512xf32>, vector<512x256xf32>, vector<16x256xf32> -> vector<16x256xf32>
    %18 = arith.addf %15, %17 : vector<16x256xf32>
    %c0_10 = arith.constant 0 : index
    %c0_11 = arith.constant 0 : index
    %19 = vector.load %arg6[%c0_10, %c0_11] : memref<16x256xf32, #tpu.memory_space<vmem>>, vector<16x256xf32>
    tpu.vector_store %arg6[%c0_10, %c0_11], %18 {strides = array<i32>} : memref<16x256xf32, #tpu.memory_space<vmem>>, vector<16x256xf32>,
    %c0_i32_12 = arith.constant 0 : i32
    %20 = arith.cmpi eq, %arg1, %c0_i32_12 : i32
    %21 = arith.extui %20 : i1 to i32
    %c0_i32_13 = arith.constant 0 : i32
    %22 = arith.cmpi ne, %21, %c0_i32_13 : i32
    scf.if %22 {
      %c0_14 = arith.constant 0 : index
      %c0_15 = arith.constant 0 : index
      %23 = vector.load %arg6[%c0_14, %c0_15] : memref<16x256xf32, #tpu.memory_space<vmem>>, vector<16x256xf32>
      %c0_16 = arith.constant 0 : index
      %c0_17 = arith.constant 0 : index
      %24 = vector.load %arg5[%c0_16, %c0_17] : memref<16x256xf32, #tpu.memory_space<vmem>>, vector<16x256xf32>
      tpu.vector_store %arg5[%c0_16, %c0_17], %23 {strides = array<i32>} : memref<16x256xf32, #tpu.memory_space<vmem>>, vector<16x256xf32>,
    } else {
    }
    return
  }
  func.func @transform_0(%arg0: i32, %arg1: i32) -> (i32, i32) {
    %c0_i32 = arith.constant 0 : i32
    %c0_i32_0 = arith.constant 0 : i32
    return %arg0, %c0_i32 : i32, i32
  }
  func.func @transform_1(%arg0: i32, %arg1: i32) -> (i32, i32) {
    %c0_i32 = arith.constant 0 : i32
    %c0_i32_0 = arith.constant 0 : i32
    return %c0_i32, %arg1 : i32, i32
  }
  func.func @transform_2(%arg0: i32, %arg1: i32) -> (i32, i32) {
    %c0_i32 = arith.constant 0 : i32
    %c0_i32_0 = arith.constant 0 : i32
    return %arg1, %c0_i32 : i32, i32
  }
  func.func @transform_3(%arg0: i32, %arg1: i32) -> (i32, i32) {
    %c0_i32 = arith.constant 0 : i32
    %c0_i32_0 = arith.constant 0 : i32
    return %arg0, %c0_i32 : i32, i32
  }
}

</mosaic_0001>

<bundles_post_ra>
// kernel: llama_mlp_packed.1
= control target key start
LH: loop header
LB: loop body
LE: loop exit
PB: predicated region body
PF: predicated region fallthrough
CT: control target
= control target key end

     0   :  { %8 = vsyncpa [#allocation4], 0  ;;  %s1674_s0 = inlined_call_operand.hbm [shape: f32[16,256], index: 0, kind: input, shape index: {}]   ;;  %s1675_s1 = inlined_call_operand.hbm [shape: f32[256,1024], index: 1, kind: input, shape index: {}]   ;;  %s1676_s2 = inlined_call_operand.hbm [shape: f32[512,256], index: 2, kind: input, shape index: {}]   ;;  %s1677_s3 = inlined_call_operand.hbm [shape: f32[16,256], index: 3, kind: output, shape index: {}]  }
   0x1   :  { %9 = vsyncpa [#allocation7], 0 }
   0x2   :  { %10 = vsyncpa [#allocation5], 0  ;;  %s1549_s12 = smov [#allocation6]   ;;  %s1455_s16 = scalar_lea.hbm %s1675_s1, 32768 }
   0x3   :  { %s28_s13 = sshll.u32 %s1549_s12, 4  ;;  %p1456_p0 = scmp.ne.s32.totalorder %s1675_s1, %s1455_s16  ;;  %s29_s13 = int_to_ptr.vmem [resolvable:$true] %s28_s13 }
   0x4   :  { %p1459_p1 = scmp.lt.u32.totalorder %s1455_s16, %s1675_s1 }
   0x6   :  { %p1461_p2 = pnand %p1459_p1, %p1456_p0 }
   0x8   :  { %1464 = shalt.err (!%p1461_p2)
}
   0x9   :  { %s1465_s21 = scalar_lea.vmem %s29_s13, 32768  ;;  %p1470_p4 = scmp.lt.s32.totalorder %s29_s13, %s29_s13 }
   0xa   :  { %p1466_p3 = scmp.ne.s32.totalorder %s29_s13, %s1465_s21  ;;  %p1471_p5 = scmp.lt.s32.totalorder %s1465_s21, %s1465_s21 }
   0xc   :  { %p1472_p6 = por %p1471_p5, %p1470_p4 }
   0xe   :  { %p1473_p7 = pnand %p1472_p6, %p1466_p3 }
  0x10   :  { %1476 = shalt.err (!%p1473_p7)
}
  0x11   :  { %s1550_s22 = smov 1024   ;;  %s1551_s23 = smov 64  }
  0x12   :  { %34 = dma.hbm_to_vmem [thread:$0]  %s1675_s1, 32768, %s29_s13, [#allocation7], %s1550_s22, %s1550_s22, %s1551_s23  }
  0x13   :  { %s1552_s26 = smov [#allocation3]   ;;  %s1477_s30 = scalar_lea.hbm %s1674_s0, 512 }
  0x14   :  { %s16_s27 = sshll.u32 %s1552_s26, 4  ;;  %p1478_p8 = scmp.ne.s32.totalorder %s1674_s0, %s1477_s30  ;;  %s17_s27 = int_to_ptr.vmem [resolvable:$true] %s16_s27 }
  0x15   :  { %p1481_p9 = scmp.lt.u32.totalorder %s1477_s30, %s1674_s0 }
  0x17   :  { %p1483_p10 = pnand %p1481_p9, %p1478_p8 }
  0x19   :  { %1486 = shalt.err (!%p1483_p10)
}
  0x1a   :  { %s1487_s8 = scalar_lea.vmem %s17_s27, 512  ;;  %p1492_p12 = scmp.lt.s32.totalorder %s17_s27, %s17_s27 }
  0x1b   :  { %p1488_p11 = scmp.ne.s32.totalorder %s17_s27, %s1487_s8  ;;  %p1493_p13 = scmp.lt.s32.totalorder %s1487_s8, %s1487_s8 }
  0x1d   :  { %p1494_p0 = por %p1493_p13, %p1492_p12 }
  0x1f   :  { %p1495_p1 = pnand %p1494_p0, %p1488_p11 }
  0x21   :  { %1498 = shalt.err (!%p1495_p1)
}
  0x22   :  { %s1553_s1 = smov 256   ;;  %s1554_s9 = smov 16  }
  0x23   :  { %22 = dma.hbm_to_vmem [thread:$0]  %s1674_s0, 512, %s17_s27, [#allocation4], %s1553_s1, %s1553_s1, %s1554_s9  }
  0x24   :  { %s1555_s12 = smov [#allocation8]   ;;  %s1499_s16 = scalar_lea.hbm %s1676_s2, 16384 }
  0x25   :  { %s40_s13 = sshll.u32 %s1555_s12, 4  ;;  %p1500_p2 = scmp.ne.s32.totalorder %s1676_s2, %s1499_s16  ;;  %s41_s13 = int_to_ptr.vmem [resolvable:$true] %s40_s13 }
  0x26   :  { %p1503_p3 = scmp.lt.u32.totalorder %s1499_s16, %s1676_s2 }
  0x28   :  { %p1505_p4 = pnand %p1503_p3, %p1500_p2 }
  0x2a   :  { %1508 = shalt.err (!%p1505_p4)
}
  0x2b   :  { %s1509_s21 = scalar_lea.vmem %s41_s13, 16384  ;;  %p1514_p6 = scmp.lt.s32.totalorder %s41_s13, %s41_s13 }
  0x2c   :  { %p1510_p5 = scmp.ne.s32.totalorder %s41_s13, %s1509_s21  ;;  %p1515_p7 = scmp.lt.s32.totalorder %s1509_s21, %s1509_s21 }
  0x2e   :  { %p1516_p8 = por %p1515_p7, %p1514_p6 }
  0x30   :  { %p1517_p9 = pnand %p1516_p8, %p1510_p5 }
  0x32   :  { %1520 = shalt.err (!%p1517_p9)
}
  0x33   :  { %46 = dma.hbm_to_vmem [thread:$0]  %s1676_s2, 16384, %s41_s13, [#allocation7], %s1553_s1, %s1553_s1, %s1554_s9  }
  0x34   :  { %1543 = dma.done.wait [#allocation4], 512  }
  0x35   :  { %1544 = vsyncadd [#allocation4], 4294966784 }
  0x36   :  { %1545 = dma.done.wait [#allocation7], 49152  }
  0x37   :  { %1546 = vsyncadd [#allocation7], 4294918144  ;;  %v69_v0 = vld [vmem:[#allocation6 + $0x8] sm:$0xff]  ;;  %v68_v2 = vld [vmem:[#allocation6] sm:$0xff]  ;;  %s1556_s2 = smov [#allocation9]  }
  0x38   :  { %v77_v1 = vld [vmem:[#allocation6 + $0x48] sm:$0xff]  ;;  %v76_v4 = vld [vmem:[#allocation6 + $0x40] sm:$0xff]  ;;  %s1006_s23 = sshll.u32 %s1556_s2, 4  ;;  %s1007_s23 = int_to_ptr.vmem [resolvable:$true] %s1006_s23 }
  0x39   :  { %v1027_v3 = vpack.c.bf16 %v77_v1, %v69_v0  ;;  %v85_v5 = vld [vmem:[#allocation6 + $0x88] sm:$0xff]  ;;  %v1029_v7 = vpack.c.bf16 %v76_v4, %v68_v2  ;;  %v84_v9 = vld [vmem:[#allocation6 + $0x80] sm:$0xff]  ;;  %s1521_s24 = scalar_lea.vmem %s1007_s23, 512  ;;  %p1526_p11 = scmp.lt.s32.totalorder %s1007_s23, %s1007_s23 }
  0x3a   :  { %v93_v6 = vld [vmem:[#allocation6 + $0xc8] sm:$0xff]  ;;  %v92_v10 = vld [vmem:[#allocation6 + $0xc0] sm:$0xff]  ;;  %p1522_p10 = scmp.ne.s32.totalorder %s1007_s23, %s1521_s24  ;;  %p1527_p12 = scmp.lt.s32.totalorder %s1521_s24, %s1521_s24 }
  0x3b   :  { %v1031_v8 = vpack.c.bf16 %v93_v6, %v85_v5  ;;  %v101_v11 = vld [vmem:[#allocation6 + $0x108] sm:$0xff]  ;;  %1028 = vmatprep.subr.bf16.mxu1 %v1027_v3  ;;  %v1033_v13 = vpack.c.bf16 %v92_v10, %v84_v9  ;;  %v100_v15 = vld [vmem:[#allocation6 + $0x100] sm:$0xff] }
  0x3c   :  { %v109_v12 = vld [vmem:[#allocation6 + $0x148] sm:$0xff]  ;;  %1030 = vmatpush1.bf16.msra.mxu1 %v1029_v7  ;;  %v108_v16 = vld [vmem:[#allocation6 + $0x140] sm:$0xff]  ;;  %p1528_p13 = por %p1527_p12, %p1526_p11 }
  0x3d   :  { %1032 = vmatprep.subr.bf16.mxu1 %v1031_v8  ;;  %v1035_v14 = vpack.c.bf16 %v109_v12, %v101_v11  ;;  %v117_v17 = vld [vmem:[#allocation6 + $0x188] sm:$0xff]  ;;  %v1037_v19 = vpack.c.bf16 %v108_v16, %v100_v15  ;;  %v116_v21 = vld [vmem:[#allocation6 + $0x180] sm:$0xff] }
  0x3e   :  { %v125_v18 = vld [vmem:[#allocation6 + $0x1c8] sm:$0xff]  ;;  %v124_v22 = vld [vmem:[#allocation6 + $0x1c0] sm:$0xff]  ;;  %p1529_p0 = pnand %p1528_p13, %p1522_p10 }
  0x3f   :  { %v1039_v20 = vpack.c.bf16 %v125_v18, %v117_v17  ;;  %v133_v23 = vld [vmem:[#allocation6 + $0x208] sm:$0xff]  ;;  %v72_v28 = vld [vmem:[#allocation6 + $0x20] sm:$0xff]  ;;  %v1041_v30 = vpack.c.bf16 %v124_v22, %v116_v21 }
  0x40   :  { %1034 = vmatpush1.bf16.msra.mxu1 %v1033_v13  ;;  %v141_v24 = vld [vmem:[#allocation6 + $0x248] sm:$0xff]  ;;  %v80_v29 = vld [vmem:[#allocation6 + $0x60] sm:$0xff] }
  0x41   :  { %1036 = vmatprep.subr.bf16.mxu1 %v1035_v14  ;;  %v73_v25 = vld [vmem:[#allocation6 + $0x28] sm:$0xff]  ;;  %v132_v31 = vld [vmem:[#allocation6 + $0x200] sm:$0xff]  ;;  %v1157_v32 = vpack.c.bf16 %v80_v29, %v72_v28  ;;  %v1043_v34 = vpack.c.bf16 %v141_v24, %v133_v23 }
  0x42   :  { %v81_v26 = vld [vmem:[#allocation6 + $0x68] sm:$0xff]  ;;  %v140_v35 = vld [vmem:[#allocation6 + $0x240] sm:$0xff] }
  0x43   :  { %v1155_v27 = vpack.c.bf16 %v81_v26, %v73_v25  ;;  %v89_v33 = vld [vmem:[#allocation6 + $0xa8] sm:$0xff]  ;;  %v88_v40 = vld [vmem:[#allocation6 + $0xa0] sm:$0xff]  ;;  %v1045_v45 = vpack.c.bf16 %v140_v35, %v132_v31 }
  0x44   :  { %1038 = vmatpush1.bf16.msra.mxu1 %v1037_v19  ;;  %v149_v36 = vld [vmem:[#allocation6 + $0x288] sm:$0xff]  ;;  %v96_v41 = vld [vmem:[#allocation6 + $0xe0] sm:$0xff] }
  0x45   :  { %1040 = vmatprep.subr.bf16.mxu1 %v1039_v20  ;;  %1156 = vmatprep.subr.bf16.mxu0 %v1155_v27  ;;  %v97_v37 = vld [vmem:[#allocation6 + $0xe8] sm:$0xff]  ;;  %v1161_v42 = vpack.c.bf16 %v96_v41, %v88_v40  ;;  %v148_v46 = vld [vmem:[#allocation6 + $0x280] sm:$0xff] }
  0x46   :  { %v157_v38 = vld [vmem:[#allocation6 + $0x2c8] sm:$0xff]  ;;  %1158 = vmatpush1.bf16.msra.mxu0 %v1157_v32  ;;  %v1159_v39 = vpack.c.bf16 %v97_v37, %v89_v33  ;;  %v104_v48 = vld [vmem:[#allocation6 + $0x120] sm:$0xff] }
  0x47   :  { %v105_v43 = vld [vmem:[#allocation6 + $0x128] sm:$0xff]  ;;  %v1047_v49 = vpack.c.bf16 %v157_v38, %v149_v36  ;;  %v156_v50 = vld [vmem:[#allocation6 + $0x2c0] sm:$0xff] }
  0x48   :  { %v113_v44 = vld [vmem:[#allocation6 + $0x168] sm:$0xff]  ;;  %1042 = vmatpush1.bf16.msra.mxu1 %v1041_v30  ;;  %1160 = vmatprep.subr.bf16.mxu0 %v1159_v39  ;;  %v112_v52 = vld [vmem:[#allocation6 + $0x160] sm:$0xff]  ;;  %v1049_v60 = vpack.c.bf16 %v156_v50, %v148_v46 }
  0x49   :  { %v1163_v47 = vpack.c.bf16 %v113_v44, %v105_v43  ;;  %1044 = vmatprep.subr.bf16.mxu1 %v1043_v34  ;;  %v165_v51 = vld [vmem:[#allocation6 + $0x308] sm:$0xff]  ;;  %v1165_v54 = vpack.c.bf16 %v112_v52, %v104_v48  ;;  %v120_v58 = vld [vmem:[#allocation6 + $0x1a0] sm:$0xff] }
  0x4a   :  { %v173_v53 = vld [vmem:[#allocation6 + $0x348] sm:$0xff]  ;;  %1162 = vmatpush1.bf16.msra.mxu0 %v1161_v42  ;;  %v128_v59 = vld [vmem:[#allocation6 + $0x1e0] sm:$0xff] }
  0x4b   :  { %v121_v55 = vld [vmem:[#allocation6 + $0x1a8] sm:$0xff]  ;;  %1164 = vmatprep.subr.bf16.mxu0 %v1163_v47  ;;  %v1051_v62 = vpack.c.bf16 %v173_v53, %v165_v51  ;;  %v164_v63 = vld [vmem:[#allocation6 + $0x300] sm:$0xff]  ;;  %v1169_v4 = vpack.c.bf16 %v128_v59, %v120_v58 }
  0x4c   :  { %v129_v56 = vld [vmem:[#allocation6 + $0x1e8] sm:$0xff]  ;;  %1046 = vmatpush1.bf16.msra.mxu1 %v1045_v45  ;;  %v172_v0 = vld [vmem:[#allocation6 + $0x340] sm:$0xff] }
  0x4d   :  { %v1167_v57 = vpack.c.bf16 %v129_v56, %v121_v55  ;;  %v137_v61 = vld [vmem:[#allocation6 + $0x228] sm:$0xff]  ;;  %1048 = vmatprep.subr.bf16.mxu1 %v1047_v49  ;;  %v136_v6 = vld [vmem:[#allocation6 + $0x220] sm:$0xff]  ;;  %v1053_v8 = vpack.c.bf16 %v172_v0, %v164_v63 }
  0x4e   :  { %v145_v1 = vld [vmem:[#allocation6 + $0x268] sm:$0xff]  ;;  %1166 = vmatpush1.bf16.msra.mxu0 %v1165_v54  ;;  %v144_v7 = vld [vmem:[#allocation6 + $0x260] sm:$0xff] }
  0x4f   :  { %v181_v2 = vld [vmem:[#allocation6 + $0x388] sm:$0xff]  ;;  %1168 = vmatprep.subr.bf16.mxu0 %v1167_v57  ;;  %v1171_v5 = vpack.c.bf16 %v145_v1, %v137_v61  ;;  %v180_v12 = vld [vmem:[#allocation6 + $0x380] sm:$0xff]  ;;  %v1173_v16 = vpack.c.bf16 %v144_v7, %v136_v6 }
  0x50   :  { %v189_v3 = vld [vmem:[#allocation6 + $0x3c8] sm:$0xff]  ;;  %1050 = vmatpush1.bf16.msra.mxu1 %v1049_v60  ;;  %v188_v13 = vld [vmem:[#allocation6 + $0x3c0] sm:$0xff] }
  0x51   :  { %v153_v9 = vld [vmem:[#allocation6 + $0x2a8] sm:$0xff]  ;;  %1052 = vmatprep.subr.bf16.mxu1 %v1051_v62  ;;  %v1055_v11 = vpack.c.bf16 %v189_v3, %v181_v2  ;;  %v152_v18 = vld [vmem:[#allocation6 + $0x2a0] sm:$0xff]  ;;  %v1057_v20 = vpack.c.bf16 %v188_v13, %v180_v12 }
  0x52   :  { %v161_v10 = vld [vmem:[#allocation6 + $0x2e8] sm:$0xff]  ;;  %1170 = vmatpush1.bf16.msra.mxu0 %v1169_v4  ;;  %v160_v19 = vld [vmem:[#allocation6 + $0x2e0] sm:$0xff] }
  0x53   :  { %v197_v14 = vld [vmem:[#allocation6 + $0x408] sm:$0xff]  ;;  %1172 = vmatprep.subr.bf16.mxu0 %v1171_v5  ;;  %v1175_v17 = vpack.c.bf16 %v161_v10, %v153_v9  ;;  %v196_v24 = vld [vmem:[#allocation6 + $0x400] sm:$0xff]  ;;  %v1177_v28 = vpack.c.bf16 %v160_v19, %v152_v18 }
  0x54   :  { %v205_v15 = vld [vmem:[#allocation6 + $0x448] sm:$0xff]  ;;  %1054 = vmatpush1.bf16.msra.mxu1 %v1053_v8  ;;  %v204_v25 = vld [vmem:[#allocation6 + $0x440] sm:$0xff] }
  0x55   :  { %v169_v21 = vld [vmem:[#allocation6 + $0x328] sm:$0xff]  ;;  %1056 = vmatprep.subr.bf16.mxu1 %v1055_v11  ;;  %v1059_v23 = vpack.c.bf16 %v205_v15, %v197_v14  ;;  %v168_v30 = vld [vmem:[#allocation6 + $0x320] sm:$0xff]  ;;  %v1061_v32 = vpack.c.bf16 %v204_v25, %v196_v24 }
  0x56   :  { %v177_v22 = vld [vmem:[#allocation6 + $0x368] sm:$0xff]  ;;  %1174 = vmatpush1.bf16.msra.mxu0 %v1173_v16  ;;  %v176_v31 = vld [vmem:[#allocation6 + $0x360] sm:$0xff] }
  0x57   :  { %v213_v26 = vld [vmem:[#allocation6 + $0x488] sm:$0xff]  ;;  %1176 = vmatprep.subr.bf16.mxu0 %v1175_v17  ;;  %v1179_v29 = vpack.c.bf16 %v177_v22, %v169_v21  ;;  %v212_v36 = vld [vmem:[#allocation6 + $0x480] sm:$0xff]  ;;  %v1181_v41 = vpack.c.bf16 %v176_v31, %v168_v30 }
  0x58   :  { %v221_v27 = vld [vmem:[#allocation6 + $0x4c8] sm:$0xff]  ;;  %1058 = vmatpush1.bf16.msra.mxu1 %v1057_v20  ;;  %v220_v37 = vld [vmem:[#allocation6 + $0x4c0] sm:$0xff] }
  0x59   :  { %v185_v33 = vld [vmem:[#allocation6 + $0x3a8] sm:$0xff]  ;;  %1060 = vmatprep.subr.bf16.mxu1 %v1059_v23  ;;  %v1063_v35 = vpack.c.bf16 %v221_v27, %v213_v26  ;;  %v184_v43 = vld [vmem:[#allocation6 + $0x3a0] sm:$0xff]  ;;  %v1065_v45 = vpack.c.bf16 %v220_v37, %v212_v36 }
  0x5a   :  { %v193_v34 = vld [vmem:[#allocation6 + $0x3e8] sm:$0xff]  ;;  %1178 = vmatpush1.bf16.msra.mxu0 %v1177_v28  ;;  %v192_v44 = vld [vmem:[#allocation6 + $0x3e0] sm:$0xff] }
  0x5b   :  { %v1619_v38 = vld [vmem:[#allocation3 + $0x8] sm:$0xff]  ;;  %1180 = vmatprep.subr.bf16.mxu0 %v1179_v29  ;;  %v1183_v42 = vpack.c.bf16 %v193_v34, %v185_v33  ;;  %v228_v49 = vld [vmem:[#allocation6 + $0x500] sm:$0xff]  ;;  %v1185_v53 = vpack.c.bf16 %v192_v44, %v184_v43 }
  0x5c   :  { %v229_v39 = vld [vmem:[#allocation6 + $0x508] sm:$0xff]  ;;  %388 = vmatprep.mubr.f32.mxu1 %v1619_v38  ;;  %542 = vmatprep.mubr.f32.mxu0 %v1619_v38  ;;  %v236_v50 = vld [vmem:[#allocation6 + $0x540] sm:$0xff] }
  0x5d   :  { %v237_v40 = vld [vmem:[#allocation6 + $0x548] sm:$0xff]  ;;  %1062 = vmatpush1.bf16.msra.mxu1 %v1061_v32  ;;  %v200_v55 = vld [vmem:[#allocation6 + $0x420] sm:$0xff]  ;;  %v1069_v57 = vpack.c.bf16 %v236_v50, %v228_v49  ;;  %v79_v49 = vld [vmem:[#allocation6 + $0x58] sm:$0xff] }
  0x5e   :  { %v201_v46 = vld [vmem:[#allocation6 + $0x428] sm:$0xff]  ;;  %1064 = vmatprep.subr.bf16.mxu1 %v1063_v35  ;;  %v1067_v48 = vpack.c.bf16 %v237_v40, %v229_v39  ;;  %1182 = vmatpush1.bf16.msra.mxu0 %v1181_v41  ;;  %v208_v56 = vld [vmem:[#allocation6 + $0x460] sm:$0xff] }
  0x5f   :  { %v209_v47 = vld [vmem:[#allocation6 + $0x468] sm:$0xff]  ;;  %1184 = vmatprep.subr.bf16.mxu0 %v1183_v42  ;;  %v244_v61 = vld [vmem:[#allocation6 + $0x580] sm:$0xff]  ;;  %v1189_v1 = vpack.c.bf16 %v208_v56, %v200_v55 }
  0x60   :  { %v245_v51 = vld [vmem:[#allocation6 + $0x588] sm:$0xff]  ;;  %v1187_v54 = vpack.c.bf16 %v209_v47, %v201_v46  ;;  %v252_v62 = vld [vmem:[#allocation6 + $0x5c0] sm:$0xff] }
  0x61   :  { %v253_v52 = vld [vmem:[#allocation6 + $0x5c8] sm:$0xff]  ;;  %1066 = vmatpush1.bf16.msra.mxu1 %v1065_v45  ;;  %v216_v3 = vld [vmem:[#allocation6 + $0x4a0] sm:$0xff]  ;;  %v1073_v5 = vpack.c.bf16 %v252_v62, %v244_v61  ;;  %v95_v61 = vld [vmem:[#allocation6 + $0xd8] sm:$0xff] }
  0x62   :  { %v217_v58 = vld [vmem:[#allocation6 + $0x4a8] sm:$0xff]  ;;  %1068 = vmatprep.subr.bf16.mxu1 %v1067_v48  ;;  %v1071_v60 = vpack.c.bf16 %v253_v52, %v245_v51  ;;  %1186 = vmatpush1.bf16.msra.mxu0 %v1185_v53  ;;  %v224_v4 = vld [vmem:[#allocation6 + $0x4e0] sm:$0xff]  ;;  %v71_v48 = vld [vmem:[#allocation6 + $0x18] sm:$0xff] }
  0x63   :  { %v225_v59 = vld [vmem:[#allocation6 + $0x4e8] sm:$0xff]  ;;  %1188 = vmatprep.subr.bf16.mxu0 %v1187_v54  ;;  %v260_v9 = vld [vmem:[#allocation6 + $0x600] sm:$0xff]  ;;  %v1193_v13 = vpack.c.bf16 %v224_v4, %v216_v3 }
  0x64   :  { %v261_v63 = vld [vmem:[#allocation6 + $0x608] sm:$0xff]  ;;  %v1191_v2 = vpack.c.bf16 %v225_v59, %v217_v58  ;;  %v268_v10 = vld [vmem:[#allocation6 + $0x640] sm:$0xff]  ;;  %v70_v58 = vld [vmem:[#allocation6 + $0x10] sm:$0xff] }
  0x65   :  { %v269_v0 = vld [vmem:[#allocation6 + $0x648] sm:$0xff]  ;;  %1070 = vmatpush1.bf16.msra.mxu1 %v1069_v57  ;;  %v232_v15 = vld [vmem:[#allocation6 + $0x520] sm:$0xff]  ;;  %v1077_v17 = vpack.c.bf16 %v268_v10, %v260_v9  ;;  %v1091_v57 = vpack.c.bf16 %v79_v49, %v71_v48  ;;  %v78_v59 = vld [vmem:[#allocation6 + $0x50] sm:$0xff] }
  0x66   :  { %v233_v6 = vld [vmem:[#allocation6 + $0x528] sm:$0xff]  ;;  %1072 = vmatprep.subr.bf16.mxu1 %v1071_v60  ;;  %v1075_v8 = vpack.c.bf16 %v269_v0, %v261_v63  ;;  %1190 = vmatpush1.bf16.msra.mxu0 %v1189_v1  ;;  %v240_v16 = vld [vmem:[#allocation6 + $0x560] sm:$0xff]  ;;  %v87_v60 = vld [vmem:[#allocation6 + $0x98] sm:$0xff]  ;;  %v1093_v3 = vpack.c.bf16 %v78_v59, %v70_v58 }
  0x67   :  { %v241_v7 = vld [vmem:[#allocation6 + $0x568] sm:$0xff]  ;;  %1192 = vmatprep.subr.bf16.mxu0 %v1191_v2  ;;  %v276_v21 = vld [vmem:[#allocation6 + $0x680] sm:$0xff]  ;;  %v1197_v25 = vpack.c.bf16 %v240_v16, %v232_v15  ;;  %v1625_v9 = vld [vmem:[#allocation3 + $0x18] sm:$0xff] }
  0x68   :  { %v277_v11 = vld [vmem:[#allocation6 + $0x688] sm:$0xff]  ;;  %v1195_v14 = vpack.c.bf16 %v241_v7, %v233_v6  ;;  %v284_v22 = vld [vmem:[#allocation6 + $0x6c0] sm:$0xff]  ;;  %v1095_v6 = vpack.c.bf16 %v95_v61, %v87_v60  ;;  %v86_v7 = vld [vmem:[#allocation6 + $0x90] sm:$0xff] }
  0x69   :  { %v285_v12 = vld [vmem:[#allocation6 + $0x6c8] sm:$0xff]  ;;  %1074 = vmatpush1.bf16.msra.mxu1 %v1073_v5  ;;  %v248_v27 = vld [vmem:[#allocation6 + $0x5a0] sm:$0xff]  ;;  %v1081_v29 = vpack.c.bf16 %v284_v22, %v276_v21  ;;  %v103_v10 = vld [vmem:[#allocation6 + $0x118] sm:$0xff] }
  0x6a   :  { %v249_v18 = vld [vmem:[#allocation6 + $0x5a8] sm:$0xff]  ;;  %1076 = vmatprep.subr.bf16.mxu1 %v1075_v8  ;;  %v1079_v20 = vpack.c.bf16 %v285_v12, %v277_v11  ;;  %1194 = vmatpush1.bf16.msra.mxu0 %v1193_v13  ;;  %v256_v28 = vld [vmem:[#allocation6 + $0x5e0] sm:$0xff]  ;;  %v94_v8 = vld [vmem:[#allocation6 + $0xd0] sm:$0xff] }
  0x6b   :  { %v257_v19 = vld [vmem:[#allocation6 + $0x5e8] sm:$0xff]  ;;  %1196 = vmatprep.subr.bf16.mxu0 %v1195_v14  ;;  %v292_v33 = vld [vmem:[#allocation6 + $0x700] sm:$0xff]  ;;  %v1201_v37 = vpack.c.bf16 %v256_v28, %v248_v27  ;;  %v111_v11 = vld [vmem:[#allocation6 + $0x158] sm:$0xff]  ;;  %v1097_v16 = vpack.c.bf16 %v94_v8, %v86_v7 }
  0x6c   :  { %v293_v23 = vld [vmem:[#allocation6 + $0x708] sm:$0xff]  ;;  %v1199_v26 = vpack.c.bf16 %v257_v19, %v249_v18  ;;  %v300_v34 = vld [vmem:[#allocation6 + $0x740] sm:$0xff]  ;;  %v1099_v18 = vpack.c.bf16 %v111_v11, %v103_v10  ;;  %v102_v19 = vld [vmem:[#allocation6 + $0x110] sm:$0xff] }
  0x6d   :  { %v301_v24 = vld [vmem:[#allocation6 + $0x748] sm:$0xff]  ;;  %1078 = vmatpush1.bf16.msra.mxu1 %v1077_v17  ;;  %v264_v40 = vld [vmem:[#allocation6 + $0x620] sm:$0xff]  ;;  %v1085_v42 = vpack.c.bf16 %v300_v34, %v292_v33  ;;  %v1629_v17 = vld [vmem:[#allocation3 + $0x10] sm:$0xff] }
  0x6e   :  { %v265_v30 = vld [vmem:[#allocation6 + $0x628] sm:$0xff]  ;;  %1080 = vmatprep.subr.bf16.mxu1 %v1079_v20  ;;  %v1083_v32 = vpack.c.bf16 %v301_v24, %v293_v23  ;;  %1198 = vmatpush1.bf16.msra.mxu0 %v1197_v25  ;;  %v272_v41 = vld [vmem:[#allocation6 + $0x660] sm:$0xff]  ;;  %v110_v20 = vld [vmem:[#allocation6 + $0x150] sm:$0xff] }
  0x6f   :  { %v273_v31 = vld [vmem:[#allocation6 + $0x668] sm:$0xff]  ;;  %1200 = vmatprep.subr.bf16.mxu0 %v1199_v26  ;;  %v308_v46 = vld [vmem:[#allocation6 + $0x780] sm:$0xff]  ;;  %v1205_v50 = vpack.c.bf16 %v272_v41, %v264_v40  ;;  %v119_v21 = vld [vmem:[#allocation6 + $0x198] sm:$0xff]  ;;  %v1101_v24 = vpack.c.bf16 %v110_v20, %v102_v19 }
  0x70   :  { %v309_v35 = vld [vmem:[#allocation6 + $0x788] sm:$0xff]  ;;  %v1203_v39 = vpack.c.bf16 %v273_v31, %v265_v30  ;;  %v316_v47 = vld [vmem:[#allocation6 + $0x7c0] sm:$0xff]  ;;  %v127_v22 = vld [vmem:[#allocation6 + $0x1d8] sm:$0xff] }
  0x71   :  { %v317_v36 = vld [vmem:[#allocation6 + $0x7c8] sm:$0xff]  ;;  %1082 = vmatpush1.bf16.msra.mxu1 %v1081_v29  ;;  %v280_v52 = vld [vmem:[#allocation6 + $0x6a0] sm:$0xff]  ;;  %v1089_v54 = vpack.c.bf16 %v316_v47, %v308_v46  ;;  %v1103_v25 = vpack.c.bf16 %v127_v22, %v119_v21  ;;  %v118_v26 = vld [vmem:[#allocation6 + $0x190] sm:$0xff] }
  0x72   :  { %v281_v43 = vld [vmem:[#allocation6 + $0x6a8] sm:$0xff]  ;;  %1084 = vmatprep.subr.bf16.mxu1 %v1083_v32  ;;  %v1087_v45 = vpack.c.bf16 %v317_v36, %v309_v35  ;;  %1202 = vmatpush1.bf16.msra.mxu0 %v1201_v37  ;;  %v288_v53 = vld [vmem:[#allocation6 + $0x6e0] sm:$0xff]  ;;  %v126_v27 = vld [vmem:[#allocation6 + $0x1d0] sm:$0xff] }
  0x73   :  { %v289_v44 = vld [vmem:[#allocation6 + $0x6e8] sm:$0xff]  ;;  %1204 = vmatprep.subr.bf16.mxu0 %v1203_v39  ;;  %v1209_v62 = vpack.c.bf16 %v288_v53, %v280_v52  ;;  %v296_v0 = vld [vmem:[#allocation6 + $0x720] sm:$0xff]  ;;  %v135_v28 = vld [vmem:[#allocation6 + $0x218] sm:$0xff]  ;;  %v1105_v30 = vpack.c.bf16 %v126_v27, %v118_v26 }
  0x74   :  { %v1207_v51 = vpack.c.bf16 %v289_v44, %v281_v43  ;;  %v297_v55 = vld [vmem:[#allocation6 + $0x728] sm:$0xff]  ;;  %v304_v1 = vld [vmem:[#allocation6 + $0x760] sm:$0xff]  ;;  %v143_v29 = vld [vmem:[#allocation6 + $0x258] sm:$0xff] }
  0x75   :  { %1086 = vmatpush1.bf16.msra.mxu1 %v1085_v42  ;;  %v305_v56 = vld [vmem:[#allocation6 + $0x768] sm:$0xff]  ;;  %v1623_v2 = vld [vmem:[#allocation3] sm:$0xff]  ;;  %v1213_v12 = vpack.c.bf16 %v304_v1, %v296_v0  ;;  %v1107_v31 = vpack.c.bf16 %v143_v29, %v135_v28  ;;  %v134_v32 = vld [vmem:[#allocation6 + $0x210] sm:$0xff] }
  0x76   :  { %1088 = vmatprep.subr.bf16.mxu1 %v1087_v45  ;;  %1206 = vmatpush1.bf16.msra.mxu0 %v1205_v50  ;;  %v1211_v63 = vpack.c.bf16 %v305_v56, %v297_v55  ;;  %v313_v4 = vld [vmem:[#allocation6 + $0x7a8] sm:$0xff]  ;;  %v312_v14 = vld [vmem:[#allocation6 + $0x7a0] sm:$0xff]  ;;  %v142_v33 = vld [vmem:[#allocation6 + $0x250] sm:$0xff] }
  0x77   :  { %1208 = vmatprep.subr.bf16.mxu0 %v1207_v51  ;;  %v321_v5 = vld [vmem:[#allocation6 + $0x7e8] sm:$0xff]  ;;  %v320_v15 = vld [vmem:[#allocation6 + $0x7e0] sm:$0xff]  ;;  %v151_v34 = vld [vmem:[#allocation6 + $0x298] sm:$0xff]  ;;  %v1109_v36 = vpack.c.bf16 %v142_v33, %v134_v32 }
  0x78   :  { %v1215_v13 = vpack.c.bf16 %v321_v5, %v313_v4  ;;  %v1217_v23 = vpack.c.bf16 %v320_v15, %v312_v14  ;;  %v159_v35 = vld [vmem:[#allocation6 + $0x2d8] sm:$0xff]  ;;  %v150_v39 = vld [vmem:[#allocation6 + $0x290] sm:$0xff]  ;;  %v701_v49 = vld [vmem:[#allocation8 + $0x8] sm:$0xff] }
  0x79   :  { %1090 = vmatpush1.bf16.msra.mxu1 %v1089_v54  ;;  %v1111_v37 = vpack.c.bf16 %v159_v35, %v151_v34  ;;  %v158_v40 = vld [vmem:[#allocation6 + $0x2d0] sm:$0xff]  ;;  %v167_v41 = vld [vmem:[#allocation6 + $0x318] sm:$0xff]  ;;  %v700_v53 = vld [vmem:[#allocation8] sm:$0xff] }
  0x7a   :  { %1092 = vmatprep.subr.bf16.mxu1 %v1091_v57  ;;  %1210 = vmatpush1.bf16.msra.mxu0 %v1209_v62  ;;  %v175_v42 = vld [vmem:[#allocation6 + $0x358] sm:$0xff]  ;;  %v1113_v43 = vpack.c.bf16 %v158_v40, %v150_v39  ;;  %v166_v45 = vld [vmem:[#allocation6 + $0x310] sm:$0xff]  ;;  %v705_v58 = vld [vmem:[#allocation8 + $0x28] sm:$0xff] }
  0x7b   :  { %1212 = vmatprep.subr.bf16.mxu0 %v1211_v63  ;;  %v1115_v44 = vpack.c.bf16 %v175_v42, %v167_v41  ;;  %v174_v46 = vld [vmem:[#allocation6 + $0x350] sm:$0xff]  ;;  %v183_v47 = vld [vmem:[#allocation6 + $0x398] sm:$0xff]  ;;  %v704_v60 = vld [vmem:[#allocation8 + $0x20] sm:$0xff] }
  0x7c   :  { %389 = vmatmul.mubr.f32.vlgmr.msra.gmra.mrb[0].mxu1 %v1623_v2  ;;  %v191_v48 = vld [vmem:[#allocation6 + $0x3d8] sm:$0xff]  ;;  %v182_v50 = vld [vmem:[#allocation6 + $0x390] sm:$0xff]  ;;  %v1117_v55 = vpack.c.bf16 %v174_v46, %v166_v45  ;;  %v709_v0 = vld [vmem:[#allocation8 + $0x48] sm:$0xff] }
  0x7d   :  { %1094 = vmatpush1.bf16.msra.mxu1 %v1093_v3  ;;  %394 = vmatprep.mubr.f32.mxu1 %v1625_v9  ;;  %v190_v51 = vld [vmem:[#allocation6 + $0x3d0] sm:$0xff]  ;;  %v703_v52 = vld [vmem:[#allocation8 + $0x18] sm:$0xff]  ;;  %v1119_v61 = vpack.c.bf16 %v191_v48, %v183_v47  ;;  %v708_v10 = vld [vmem:[#allocation8 + $0x40] sm:$0xff] }
  0x7e   :  { %1096 = vmatprep.subr.bf16.mxu1 %v1095_v6  ;;  %1214 = vmatpush1.bf16.msra.mxu0 %v1213_v12  ;;  %v702_v54 = vld [vmem:[#allocation8 + $0x10] sm:$0xff]  ;;  %v1283_v56 = vpack.c.bf16 %v703_v52, %v701_v49  ;;  %v707_v59 = vld [vmem:[#allocation8 + $0x38] sm:$0xff]  ;;  %v1121_v6 = vpack.c.bf16 %v190_v51, %v182_v50  ;;  %v713_v14 = vld [vmem:[#allocation8 + $0x68] sm:$0xff] }
  0x7f   :  { %1216 = vmatprep.subr.bf16.mxu0 %v1215_v13  ;;  %v1285_v57 = vpack.c.bf16 %v702_v54, %v700_v53  ;;  %v1287_v62 = vpack.c.bf16 %v707_v59, %v705_v58  ;;  %v706_v63 = vld [vmem:[#allocation8 + $0x30] sm:$0xff]  ;;  %v711_v1 = vld [vmem:[#allocation8 + $0x58] sm:$0xff]  ;;  %v717_v27 = vld [vmem:[#allocation8 + $0x88] sm:$0xff] }
  0x80   :  { %395 = vmatmul.mubr.f32.gmra.mrb[2].mxu1 %v1629_v17  ;;  %v199_v3 = vld [vmem:[#allocation6 + $0x418] sm:$0xff]  ;;  %v1289_v5 = vpack.c.bf16 %v706_v63, %v704_v60  ;;  %v198_v7 = vld [vmem:[#allocation6 + $0x410] sm:$0xff]  ;;  %v1291_v8 = vpack.c.bf16 %v711_v1, %v709_v0  ;;  %v716_v35 = vld [vmem:[#allocation8 + $0x80] sm:$0xff] }
  0x81   :  { %1098 = vmatpush1.bf16.msra.mxu1 %v1097_v16  ;;  %465 = vmatprep.mubr.f32.mxu1 %v1619_v38  ;;  %v207_v4 = vld [vmem:[#allocation6 + $0x458] sm:$0xff]  ;;  %v710_v11 = vld [vmem:[#allocation8 + $0x50] sm:$0xff]  ;;  %v721_v40 = vld [vmem:[#allocation8 + $0xa8] sm:$0xff] }
  0x82   :  { %1100 = vmatprep.subr.bf16.mxu1 %v1099_v18  ;;  %1218 = vmatpush1.bf16.msra.mxu0 %v1217_v23  ;;  %v1123_v12 = vpack.c.bf16 %v207_v4, %v199_v3  ;;  %v206_v13 = vld [vmem:[#allocation6 + $0x450] sm:$0xff]  ;;  %v715_v15 = vld [vmem:[#allocation8 + $0x78] sm:$0xff]  ;;  %v1293_v19 = vpack.c.bf16 %v710_v11, %v708_v10  ;;  %v712_v23 = vld [vmem:[#allocation8 + $0x60] sm:$0xff] }
  0x83   :  { %1284 = vmatprep.subr.bf16.mxu0 %v1283_v56  ;;  %v215_v16 = vld [vmem:[#allocation6 + $0x498] sm:$0xff]  ;;  %v1125_v20 = vpack.c.bf16 %v206_v13, %v198_v7  ;;  %v214_v21 = vld [vmem:[#allocation6 + $0x490] sm:$0xff]  ;;  %v1295_v22 = vpack.c.bf16 %v715_v15, %v713_v14  ;;  %v720_v48 = vld [vmem:[#allocation8 + $0xa0] sm:$0xff] }
  0x84   :  { %v223_v18 = vld [vmem:[#allocation6 + $0x4d8] sm:$0xff]  ;;  %v222_v26 = vld [vmem:[#allocation6 + $0x4d0] sm:$0xff]  ;;  %v725_v52 = vld [vmem:[#allocation8 + $0xc8] sm:$0xff] }
  0x85   :  { %1102 = vmatpush1.bf16.msra.mxu1 %v1101_v24  ;;  %543 = vmatmul.mubr.f32.vlgmr.msra.gmra.mrb[0].mxu0 %v1623_v2  ;;  %v714_v24 = vld [vmem:[#allocation8 + $0x70] sm:$0xff]  ;;  %v719_v28 = vld [vmem:[#allocation8 + $0x98] sm:$0xff]  ;;  %v1129_v32 = vpack.c.bf16 %v222_v26, %v214_v21  ;;  %v724_v60 = vld [vmem:[#allocation8 + $0xc0] sm:$0xff] }
  0x86   :  { %1104 = vmatprep.subr.bf16.mxu1 %v1103_v25  ;;  %548 = vmatprep.mubr.f32.mxu0 %v1625_v9  ;;  %v1127_v25 = vpack.c.bf16 %v223_v18, %v215_v16  ;;  %v231_v29 = vld [vmem:[#allocation6 + $0x518] sm:$0xff]  ;;  %v230_v33 = vld [vmem:[#allocation6 + $0x510] sm:$0xff]  ;;  %v1299_v34 = vpack.c.bf16 %v719_v28, %v717_v27  ;;  %v729_v0 = vld [vmem:[#allocation8 + $0xe8] sm:$0xff] }
  0x87   :  { %1286 = vmatpush1.bf16.msra.mxu0 %v1285_v57  ;;  %v238_v39 = vld [vmem:[#allocation6 + $0x550] sm:$0xff]  ;;  %v723_v41 = vld [vmem:[#allocation8 + $0xb8] sm:$0xff] }
  0x88   :  { %1288 = vmatprep.subr.bf16.mxu0 %v1287_v62  ;;  %v247_v42 = vld [vmem:[#allocation6 + $0x598] sm:$0xff]  ;;  %v1133_v45 = vpack.c.bf16 %v238_v39, %v230_v33  ;;  %v246_v46 = vld [vmem:[#allocation6 + $0x590] sm:$0xff]  ;;  %v1303_v47 = vpack.c.bf16 %v723_v41, %v721_v40 }
  0x89   :  { %1106 = vmatpush1.bf16.msra.mxu1 %v1105_v30  ;;  %549 = vmatmul.mubr.f32.gmra.mrb[2].mxu0 %v1629_v17  ;;  %v239_v30 = vld [vmem:[#allocation6 + $0x558] sm:$0xff]  ;;  %v722_v49 = vld [vmem:[#allocation8 + $0xb0] sm:$0xff] }
  0x8a   :  { %1108 = vmatprep.subr.bf16.mxu1 %v1107_v31  ;;  %v1297_v31 = vpack.c.bf16 %v714_v24, %v712_v23  ;;  %v254_v51 = vld [vmem:[#allocation6 + $0x5d0] sm:$0xff]  ;;  %v727_v53 = vld [vmem:[#allocation8 + $0xd8] sm:$0xff]  ;;  %v1305_v56 = vpack.c.bf16 %v722_v49, %v720_v48 }
  0x8b   :  { %1290 = vmatpush1.bf16.msra.mxu0 %v1289_v5  ;;  %v263_v54 = vld [vmem:[#allocation6 + $0x618] sm:$0xff]  ;;  %v1137_v57 = vpack.c.bf16 %v254_v51, %v246_v46  ;;  %v262_v58 = vld [vmem:[#allocation6 + $0x610] sm:$0xff]  ;;  %v1307_v59 = vpack.c.bf16 %v727_v53, %v725_v52 }
  0x8c   :  { %1292 = vmatprep.subr.bf16.mxu0 %v1291_v8  ;;  %v270_v63 = vld [vmem:[#allocation6 + $0x650] sm:$0xff]  ;;  %v731_v1 = vld [vmem:[#allocation8 + $0xf8] sm:$0xff]  ;;  %v728_v8 = vld [vmem:[#allocation8 + $0xe0] sm:$0xff] }
  0x8d   :  { %1110 = vmatpush1.bf16.msra.mxu1 %v1109_v36  ;;  %v718_v36 = vld [vmem:[#allocation8 + $0x90] sm:$0xff]  ;;  %v279_v3 = vld [vmem:[#allocation6 + $0x698] sm:$0xff]  ;;  %v1311_v7 = vpack.c.bf16 %v731_v1, %v729_v0 }
  0x8e   :  { %1112 = vmatprep.subr.bf16.mxu1 %v1111_v37  ;;  %v1131_v37 = vpack.c.bf16 %v239_v30, %v231_v29  ;;  %v287_v4 = vld [vmem:[#allocation6 + $0x6d8] sm:$0xff]  ;;  %v730_v10 = vld [vmem:[#allocation8 + $0xf0] sm:$0xff] }
  0x8f   :  { %1294 = vmatpush1.bf16.msra.mxu0 %v1293_v19  ;;  %v1143_v11 = vpack.c.bf16 %v287_v4, %v279_v3  ;;  %v286_v13 = vld [vmem:[#allocation6 + $0x6d0] sm:$0xff]  ;;  %v295_v14 = vld [vmem:[#allocation6 + $0x718] sm:$0xff]  ;;  %v1313_v16 = vpack.c.bf16 %v730_v10, %v728_v8 }
  0x90   :  { %1296 = vmatprep.subr.bf16.mxu0 %v1295_v22  ;;  %v303_v15 = vld [vmem:[#allocation6 + $0x758] sm:$0xff]  ;;  %v302_v21 = vld [vmem:[#allocation6 + $0x750] sm:$0xff] }
  0x91   :  { %1114 = vmatpush1.bf16.msra.mxu1 %v1113_v43  ;;  %v255_v43 = vld [vmem:[#allocation6 + $0x5d8] sm:$0xff]  ;;  %v1147_v19 = vpack.c.bf16 %v303_v15, %v295_v14  ;;  %v310_v26 = vld [vmem:[#allocation6 + $0x790] sm:$0xff] }
  0x92   :  { %1116 = vmatprep.subr.bf16.mxu1 %v1115_v44  ;;  %v1301_v44 = vpack.c.bf16 %v718_v36, %v716_v35  ;;  %v1135_v50 = vpack.c.bf16 %v255_v43, %v247_v42  ;;  %v311_v22 = vld [vmem:[#allocation6 + $0x798] sm:$0xff]  ;;  %v318_v27 = vld [vmem:[#allocation6 + $0x7d0] sm:$0xff] }
  0x93   :  { %1298 = vmatpush1.bf16.msra.mxu0 %v1297_v31  ;;  %v319_v23 = vld [vmem:[#allocation6 + $0x7d8] sm:$0xff]  ;;  %v1153_v30 = vpack.c.bf16 %v318_v27, %v310_v26  ;;  %v82_v33 = vld [vmem:[#allocation6 + $0x70] sm:$0xff] }
  0x94   :  { %1300 = vmatprep.subr.bf16.mxu0 %v1299_v34  ;;  %v75_v28 = vld [vmem:[#allocation6 + $0x38] sm:$0xff]  ;;  %v90_v39 = vld [vmem:[#allocation6 + $0xb0] sm:$0xff] }
  0x95   :  { %1118 = vmatpush1.bf16.msra.mxu1 %v1117_v55  ;;  %v271_v55 = vld [vmem:[#allocation6 + $0x658] sm:$0xff]  ;;  %v98_v40 = vld [vmem:[#allocation6 + $0xf0] sm:$0xff] }
  0x96   :  { %1120 = vmatprep.subr.bf16.mxu1 %v1119_v61  ;;  %v726_v61 = vld [vmem:[#allocation8 + $0xd0] sm:$0xff]  ;;  %v1139_v62 = vpack.c.bf16 %v271_v55, %v263_v54  ;;  %v83_v29 = vld [vmem:[#allocation6 + $0x78] sm:$0xff]  ;;  %v1225_v43 = vpack.c.bf16 %v98_v40, %v90_v39 }
  0x97   :  { %1302 = vmatpush1.bf16.msra.mxu0 %v1301_v44  ;;  %v1309_v5 = vpack.c.bf16 %v726_v61, %v724_v60  ;;  %v1219_v31 = vpack.c.bf16 %v83_v29, %v75_v28  ;;  %v91_v34 = vld [vmem:[#allocation6 + $0xb8] sm:$0xff]  ;;  %v114_v46 = vld [vmem:[#allocation6 + $0x170] sm:$0xff] }
  0x98   :  { %1304 = vmatprep.subr.bf16.mxu0 %v1303_v47  ;;  %v99_v35 = vld [vmem:[#allocation6 + $0xf8] sm:$0xff]  ;;  %v122_v51 = vld [vmem:[#allocation6 + $0x1b0] sm:$0xff] }
  0x99   :  { %1122 = vmatpush1.bf16.msra.mxu1 %v1121_v6  ;;  %v1141_v6 = vpack.c.bf16 %v270_v63, %v262_v58  ;;  %v107_v41 = vld [vmem:[#allocation6 + $0x138] sm:$0xff]  ;;  %v130_v52 = vld [vmem:[#allocation6 + $0x1f0] sm:$0xff] }
  0x9a   :  { %1124 = vmatprep.subr.bf16.mxu1 %v1123_v12  ;;  %v278_v12 = vld [vmem:[#allocation6 + $0x690] sm:$0xff]  ;;  %v115_v42 = vld [vmem:[#allocation6 + $0x178] sm:$0xff]  ;;  %v1233_v55 = vpack.c.bf16 %v130_v52, %v122_v51 }
  0x9b   :  { %1306 = vmatpush1.bf16.msra.mxu0 %v1305_v56  ;;  %v1145_v18 = vpack.c.bf16 %v286_v13, %v278_v12  ;;  %v1227_v44 = vpack.c.bf16 %v115_v42, %v107_v41  ;;  %v123_v47 = vld [vmem:[#allocation6 + $0x1b8] sm:$0xff]  ;;  %v146_v58 = vld [vmem:[#allocation6 + $0x270] sm:$0xff] }
  0x9c   :  { %1308 = vmatprep.subr.bf16.mxu0 %v1307_v59  ;;  %v131_v48 = vld [vmem:[#allocation6 + $0x1f8] sm:$0xff]  ;;  %v154_v63 = vld [vmem:[#allocation6 + $0x2b0] sm:$0xff] }
  0x9d   :  { %1126 = vmatpush1.bf16.msra.mxu1 %v1125_v20  ;;  %v294_v20 = vld [vmem:[#allocation6 + $0x710] sm:$0xff]  ;;  %v139_v53 = vld [vmem:[#allocation6 + $0x238] sm:$0xff] }
  0x9e   :  { %1128 = vmatprep.subr.bf16.mxu1 %v1127_v25  ;;  %v1149_v24 = vpack.c.bf16 %v302_v21, %v294_v20  ;;  %v1151_v25 = vpack.c.bf16 %v319_v23, %v311_v22  ;;  %v147_v54 = vld [vmem:[#allocation6 + $0x278] sm:$0xff]  ;;  %v170_v4 = vld [vmem:[#allocation6 + $0x330] sm:$0xff] }
  0x9f   :  { %1310 = vmatpush1.bf16.msra.mxu0 %v1309_v5  ;;  %v1235_v56 = vpack.c.bf16 %v147_v54, %v139_v53  ;;  %v155_v59 = vld [vmem:[#allocation6 + $0x2b8] sm:$0xff]  ;;  %v733_v5 = vld [vmem:[#allocation8 + $0x108] sm:$0xff]  ;;  %v178_v8 = vld [vmem:[#allocation6 + $0x370] sm:$0xff] }
  0xa0   :  { %1312 = vmatprep.subr.bf16.mxu0 %v1311_v7  ;;  %v163_v60 = vld [vmem:[#allocation6 + $0x2f8] sm:$0xff]  ;;  %v734_v12 = vld [vmem:[#allocation8 + $0x110] sm:$0xff] }
  0xa1   :  { %1130 = vmatpush1.bf16.msra.mxu1 %v1129_v32  ;;  %v74_v32 = vld [vmem:[#allocation6 + $0x30] sm:$0xff]  ;;  %v171_v0 = vld [vmem:[#allocation6 + $0x338] sm:$0xff] }
  0xa2   :  { %1132 = vmatprep.subr.bf16.mxu1 %v1131_v37  ;;  %v1221_v36 = vpack.c.bf16 %v82_v33, %v74_v32  ;;  %v1223_v37 = vpack.c.bf16 %v99_v35, %v91_v34  ;;  %v179_v1 = vld [vmem:[#allocation6 + $0x378] sm:$0xff]  ;;  %v194_v22 = vld [vmem:[#allocation6 + $0x3f0] sm:$0xff] }
  0xa3   :  { %1314 = vmatpush1.bf16.msra.mxu0 %v1313_v16  ;;  %v1243_v7 = vpack.c.bf16 %v179_v1, %v171_v0  ;;  %v187_v13 = vld [vmem:[#allocation6 + $0x3b8] sm:$0xff]  ;;  %v1245_v16 = vpack.c.bf16 %v178_v8, %v170_v4  ;;  %v210_v34 = vld [vmem:[#allocation6 + $0x470] sm:$0xff]  ;;  %v753_v4 = vld [vmem:[#allocation8 + $0x1a8] sm:$0xff] }
  0xa4   :  { %v195_v14 = vld [vmem:[#allocation6 + $0x3f8] sm:$0xff] }
  0xa5   :  { %1134 = vmatpush1.bf16.msra.mxu1 %v1133_v45  ;;  %v106_v45 = vld [vmem:[#allocation6 + $0x130] sm:$0xff]  ;;  %v739_v20 = vld [vmem:[#allocation8 + $0x138] sm:$0xff]  ;;  %v1247_v21 = vpack.c.bf16 %v195_v14, %v187_v13 }
  0xa6   :  { %1136 = vmatprep.subr.bf16.mxu1 %v1135_v50  ;;  %v1229_v49 = vpack.c.bf16 %v114_v46, %v106_v45  ;;  %v1231_v50 = vpack.c.bf16 %v131_v48, %v123_v47  ;;  %v203_v26 = vld [vmem:[#allocation6 + $0x438] sm:$0xff]  ;;  %v226_v47 = vld [vmem:[#allocation6 + $0x4f0] sm:$0xff] }
  0xa7   :  { %v211_v27 = vld [vmem:[#allocation6 + $0x478] sm:$0xff] }
  0xa8   :  { %v743_v32 = vld [vmem:[#allocation8 + $0x158] sm:$0xff]  ;;  %v1251_v33 = vpack.c.bf16 %v211_v27, %v203_v26 }
  0xa9   :  { %1138 = vmatpush1.bf16.msra.mxu1 %v1137_v57  ;;  %v138_v57 = vld [vmem:[#allocation6 + $0x230] sm:$0xff]  ;;  %v219_v39 = vld [vmem:[#allocation6 + $0x4b8] sm:$0xff] }
  0xaa   :  { %1140 = vmatprep.subr.bf16.mxu1 %v1139_v62  ;;  %v1237_v61 = vpack.c.bf16 %v146_v58, %v138_v57  ;;  %v1239_v62 = vpack.c.bf16 %v163_v60, %v155_v59  ;;  %v227_v40 = vld [vmem:[#allocation6 + $0x4f8] sm:$0xff]  ;;  %v242_v59 = vld [vmem:[#allocation6 + $0x570] sm:$0xff] }
  0xab   :  { %v747_v45 = vld [vmem:[#allocation8 + $0x178] sm:$0xff]  ;;  %v1255_v46 = vpack.c.bf16 %v227_v40, %v219_v39 }
  0xac   :  { %v235_v51 = vld [vmem:[#allocation6 + $0x538] sm:$0xff] }
  0xad   :  { %1142 = vmatpush1.bf16.msra.mxu1 %v1141_v6  ;;  %v735_v6 = vld [vmem:[#allocation8 + $0x118] sm:$0xff] }
  0xae   :  { %1144 = vmatprep.subr.bf16.mxu1 %v1143_v11  ;;  %v1315_v10 = vpack.c.bf16 %v735_v6, %v733_v5  ;;  %v732_v11 = vld [vmem:[#allocation8 + $0x100] sm:$0xff]  ;;  %v243_v52 = vld [vmem:[#allocation6 + $0x578] sm:$0xff] }
  0xaf   :  { %v1317_v15 = vpack.c.bf16 %v734_v12, %v732_v11  ;;  %v751_v57 = vld [vmem:[#allocation8 + $0x198] sm:$0xff]  ;;  %v1259_v58 = vpack.c.bf16 %v243_v52, %v235_v51  ;;  %v754_v11 = vld [vmem:[#allocation8 + $0x1b0] sm:$0xff]  ;;  %v765_v52 = vld [vmem:[#allocation8 + $0x208] sm:$0xff] }
  0xb0   :  { %1316 = vmatprep.subr.bf16.mxu0 %v1315_v10  ;;  %v755_v5 = vld [vmem:[#allocation8 + $0x1b8] sm:$0xff]  ;;  %v752_v10 = vld [vmem:[#allocation8 + $0x1a0] sm:$0xff] }
  0xb1   :  { %1146 = vmatpush1.bf16.msra.mxu1 %v1145_v18  ;;  %v186_v18 = vld [vmem:[#allocation6 + $0x3b0] sm:$0xff]  ;;  %1318 = vmatpush1.bf16.msra.mxu0 %v1317_v15  ;;  %v1335_v8 = vpack.c.bf16 %v755_v5, %v753_v4  ;;  %v267_v12 = vld [vmem:[#allocation6 + $0x638] sm:$0xff]  ;;  %v1337_v14 = vpack.c.bf16 %v754_v11, %v752_v10 }
  0xb2   :  { %1148 = vmatprep.subr.bf16.mxu1 %v1147_v19  ;;  %v737_v19 = vld [vmem:[#allocation8 + $0x128] sm:$0xff]  ;;  %v1249_v29 = vpack.c.bf16 %v194_v22, %v186_v18  ;;  %v275_v13 = vld [vmem:[#allocation6 + $0x678] sm:$0xff] }
  0xb3   :  { %v1319_v23 = vpack.c.bf16 %v739_v20, %v737_v19  ;;  %v757_v18 = vld [vmem:[#allocation8 + $0x1c8] sm:$0xff]  ;;  %v759_v19 = vld [vmem:[#allocation8 + $0x1d8] sm:$0xff]  ;;  %v1267_v20 = vpack.c.bf16 %v275_v13, %v267_v12  ;;  %v764_v12 = vld [vmem:[#allocation8 + $0x200] sm:$0xff] }
  0xb4   :  { %v1339_v22 = vpack.c.bf16 %v759_v19, %v757_v18  ;;  %v291_v26 = vld [vmem:[#allocation6 + $0x6f8] sm:$0xff]  ;;  %v766_v13 = vld [vmem:[#allocation8 + $0x210] sm:$0xff] }
  0xb5   :  { %1150 = vmatpush1.bf16.msra.mxu1 %v1149_v24  ;;  %v736_v24 = vld [vmem:[#allocation8 + $0x120] sm:$0xff]  ;;  %1320 = vmatprep.subr.bf16.mxu0 %v1319_v23  ;;  %v307_v39 = vld [vmem:[#allocation6 + $0x778] sm:$0xff] }
  0xb6   :  { %1152 = vmatprep.subr.bf16.mxu1 %v1151_v25  ;;  %v738_v25 = vld [vmem:[#allocation8 + $0x130] sm:$0xff]  ;;  %v756_v23 = vld [vmem:[#allocation8 + $0x1c0] sm:$0xff] }
  0xb7   :  { %v1321_v28 = vpack.c.bf16 %v738_v25, %v736_v24  ;;  %v758_v24 = vld [vmem:[#allocation8 + $0x1d0] sm:$0xff]  ;;  %v283_v25 = vld [vmem:[#allocation6 + $0x6b8] sm:$0xff] }
  0xb8   :  { %v1341_v27 = vpack.c.bf16 %v758_v24, %v756_v23 }
  0xb9   :  { %1154 = vmatpush1.bf16.msra.mxu1 %v1153_v30  ;;  %v202_v30 = vld [vmem:[#allocation6 + $0x430] sm:$0xff]  ;;  %1322 = vmatpush1.bf16.msra.mxu0 %v1321_v28 }
  0xba   :  { %1220 = vmatprep.subr.bf16.mxu1 %v1219_v31  ;;  %v741_v31 = vld [vmem:[#allocation8 + $0x148] sm:$0xff]  ;;  %v1253_v42 = vpack.c.bf16 %v210_v34, %v202_v30 }
  0xbb   :  { %v1323_v35 = vpack.c.bf16 %v743_v32, %v741_v31  ;;  %v761_v30 = vld [vmem:[#allocation8 + $0x1e8] sm:$0xff]  ;;  %v763_v31 = vld [vmem:[#allocation8 + $0x1f8] sm:$0xff]  ;;  %v1271_v32 = vpack.c.bf16 %v291_v26, %v283_v25  ;;  %v768_v25 = vld [vmem:[#allocation8 + $0x220] sm:$0xff] }
  0xbc   :  { %466 = vmatmul.mubr.f32.vlgmr.msra.gmra.mrb[4].mxu1 %v1623_v2  ;;  %v1343_v34 = vpack.c.bf16 %v763_v31, %v761_v30  ;;  %v770_v26 = vld [vmem:[#allocation8 + $0x230] sm:$0xff] }
  0xbd   :  { %1222 = vmatpush1.bf16.msra.mxu1 %v1221_v36  ;;  %471 = vmatprep.mubr.f32.mxu1 %v1625_v9  ;;  %v740_v36 = vld [vmem:[#allocation8 + $0x140] sm:$0xff] }
  0xbe   :  { %1224 = vmatprep.subr.bf16.mxu1 %v1223_v37  ;;  %v742_v37 = vld [vmem:[#allocation8 + $0x150] sm:$0xff]  ;;  %1324 = vmatprep.subr.bf16.mxu0 %v1323_v35  ;;  %v760_v35 = vld [vmem:[#allocation8 + $0x1e0] sm:$0xff] }
  0xbf   :  { %v1325_v41 = vpack.c.bf16 %v742_v37, %v740_v36  ;;  %v762_v36 = vld [vmem:[#allocation8 + $0x1f0] sm:$0xff]  ;;  %v299_v37 = vld [vmem:[#allocation6 + $0x738] sm:$0xff] }
  0xc0   :  { %472 = vmatmul.mubr.f32.gmra.mrb[6].mxu1 %v1629_v17  ;;  %v1345_v40 = vpack.c.bf16 %v762_v36, %v760_v35  ;;  %v774_v35 = vld [vmem:[#allocation8 + $0x250] sm:$0xff]  ;;  %v777_v36 = vld [vmem:[#allocation8 + $0x268] sm:$0xff] }
  0xc1   :  { %1226 = vmatpush1.bf16.msra.mxu1 %v1225_v43  ;;  %619 = vmatprep.mubr.f32.mxu1 %v1619_v38  ;;  %v162_v38 = vld [vmem:[#allocation6 + $0x2f0] sm:$0xff] }
  0xc2   :  { %1228 = vmatprep.subr.bf16.mxu1 %v1227_v44  ;;  %v1241_v3 = vpack.c.bf16 %v162_v38, %v154_v63  ;;  %v218_v43 = vld [vmem:[#allocation6 + $0x4b0] sm:$0xff]  ;;  %1326 = vmatpush1.bf16.msra.mxu0 %v1325_v41  ;;  %v745_v44 = vld [vmem:[#allocation8 + $0x168] sm:$0xff]  ;;  %v251_v63 = vld [vmem:[#allocation6 + $0x5b8] sm:$0xff] }
  0xc3   :  { %v1327_v48 = vpack.c.bf16 %v747_v45, %v745_v44  ;;  %v1257_v54 = vpack.c.bf16 %v226_v47, %v218_v43  ;;  %v259_v38 = vld [vmem:[#allocation6 + $0x5f8] sm:$0xff]  ;;  %v298_v43 = vld [vmem:[#allocation6 + $0x730] sm:$0xff] }
  0xc4   :  { %v1263_v6 = vpack.c.bf16 %v259_v38, %v251_v63  ;;  %v306_v44 = vld [vmem:[#allocation6 + $0x770] sm:$0xff]  ;;  %v315_v45 = vld [vmem:[#allocation6 + $0x7b8] sm:$0xff] }
  0xc5   :  { %1230 = vmatpush1.bf16.msra.mxu1 %v1229_v49  ;;  %v744_v49 = vld [vmem:[#allocation8 + $0x160] sm:$0xff]  ;;  %1328 = vmatprep.subr.bf16.mxu0 %v1327_v48  ;;  %v1277_v47 = vpack.c.bf16 %v306_v44, %v298_v43  ;;  %v781_v43 = vld [vmem:[#allocation8 + $0x288] sm:$0xff]  ;;  %v783_v44 = vld [vmem:[#allocation8 + $0x298] sm:$0xff] }
  0xc6   :  { %1232 = vmatprep.subr.bf16.mxu1 %v1231_v50  ;;  %v746_v50 = vld [vmem:[#allocation8 + $0x170] sm:$0xff] }
  0xc7   :  { %v1329_v53 = vpack.c.bf16 %v746_v50, %v744_v49  ;;  %v314_v49 = vld [vmem:[#allocation6 + $0x7b0] sm:$0xff] }
  0xc8   :  { %v322_v50 = vld [vmem:[#allocation6 + $0x7f0] sm:$0xff] }
  0xc9   :  { %1234 = vmatpush1.bf16.msra.mxu1 %v1233_v55  ;;  %v234_v55 = vld [vmem:[#allocation6 + $0x530] sm:$0xff]  ;;  %1330 = vmatpush1.bf16.msra.mxu0 %v1329_v53  ;;  %v1281_v51 = vpack.c.bf16 %v322_v50, %v314_v49  ;;  %v767_v53 = vld [vmem:[#allocation8 + $0x218] sm:$0xff]  ;;  %v785_v49 = vld [vmem:[#allocation8 + $0x2a8] sm:$0xff] }
  0xca   :  { %1236 = vmatprep.subr.bf16.mxu1 %v1235_v56  ;;  %v749_v56 = vld [vmem:[#allocation8 + $0x188] sm:$0xff]  ;;  %v1261_v1 = vpack.c.bf16 %v242_v59, %v234_v55  ;;  %v787_v50 = vld [vmem:[#allocation8 + $0x2b8] sm:$0xff] }
  0xcb   :  { %v1331_v60 = vpack.c.bf16 %v751_v57, %v749_v56 }
  0xcd   :  { %1238 = vmatpush1.bf16.msra.mxu1 %v1237_v61  ;;  %v748_v61 = vld [vmem:[#allocation8 + $0x180] sm:$0xff]  ;;  %1332 = vmatprep.subr.bf16.mxu0 %v1331_v60 }
  0xce   :  { %1240 = vmatprep.subr.bf16.mxu1 %v1239_v62  ;;  %v750_v62 = vld [vmem:[#allocation8 + $0x190] sm:$0xff] }
  0xcf   :  { %v1333_v0 = vpack.c.bf16 %v750_v62, %v748_v61 }
  0xd1   :  { %1242 = vmatpush1.bf16.msra.mxu1 %v1241_v3  ;;  %v250_v3 = vld [vmem:[#allocation6 + $0x5b0] sm:$0xff]  ;;  %1334 = vmatpush1.bf16.msra.mxu0 %v1333_v0 }
  0xd2   :  { %1244 = vmatprep.subr.bf16.mxu1 %v1243_v7  ;;  %v258_v7 = vld [vmem:[#allocation6 + $0x5f0] sm:$0xff]  ;;  %1336 = vmatprep.subr.bf16.mxu0 %v1335_v8 }
  0xd3   :  { %v1265_v15 = vpack.c.bf16 %v258_v7, %v250_v3 }
  0xd5   :  { %1246 = vmatpush1.bf16.msra.mxu1 %v1245_v16  ;;  %v266_v16 = vld [vmem:[#allocation6 + $0x630] sm:$0xff]  ;;  %1338 = vmatpush1.bf16.msra.mxu0 %v1337_v14 }
  0xd6   :  { %1248 = vmatprep.subr.bf16.mxu1 %v1247_v21  ;;  %v274_v21 = vld [vmem:[#allocation6 + $0x670] sm:$0xff]  ;;  %1340 = vmatprep.subr.bf16.mxu0 %v1339_v22 }
  0xd7   :  { %v1269_v28 = vpack.c.bf16 %v274_v21, %v266_v16  ;;  %v771_v16 = vld [vmem:[#allocation8 + $0x238] sm:$0xff]  ;;  %v1349_v21 = vpack.c.bf16 %v766_v13, %v764_v12  ;;  %v802_v12 = vld [vmem:[#allocation8 + $0x330] sm:$0xff] }
  0xd9   :  { %1250 = vmatpush1.bf16.msra.mxu1 %v1249_v29  ;;  %v282_v29 = vld [vmem:[#allocation6 + $0x6b0] sm:$0xff]  ;;  %1342 = vmatpush1.bf16.msra.mxu0 %v1341_v27 }
  0xda   :  { %1252 = vmatprep.subr.bf16.mxu1 %v1251_v33  ;;  %v290_v33 = vld [vmem:[#allocation6 + $0x6f0] sm:$0xff]  ;;  %1344 = vmatprep.subr.bf16.mxu0 %v1343_v34  ;;  %v772_v34 = vld [vmem:[#allocation8 + $0x240] sm:$0xff] }
  0xdb   :  { %v1273_v41 = vpack.c.bf16 %v290_v33, %v282_v29  ;;  %v775_v29 = vld [vmem:[#allocation8 + $0x258] sm:$0xff] }
  0xdd   :  { %1254 = vmatpush1.bf16.msra.mxu1 %v1253_v42  ;;  %1346 = vmatpush1.bf16.msra.mxu0 %v1345_v40  ;;  %v1275_v42 = vpack.c.bf16 %v307_v39, %v299_v37  ;;  %v779_v37 = vld [vmem:[#allocation8 + $0x278] sm:$0xff]  ;;  %v1357_v39 = vpack.c.bf16 %v774_v35, %v772_v34  ;;  %v812_v34 = vld [vmem:[#allocation8 + $0x380] sm:$0xff]  ;;  %v814_v35 = vld [vmem:[#allocation8 + $0x390] sm:$0xff] }
  0xde   :  { %1256 = vmatprep.subr.bf16.mxu1 %v1255_v46  ;;  %v323_v46 = vld [vmem:[#allocation6 + $0x7f8] sm:$0xff]  ;;  %v1359_v40 = vpack.c.bf16 %v779_v37, %v777_v36  ;;  %v817_v36 = vld [vmem:[#allocation8 + $0x3a8] sm:$0xff] }
  0xdf   :  { %v1279_v48 = vpack.c.bf16 %v323_v46, %v315_v45  ;;  %v1363_v46 = vpack.c.bf16 %v783_v44, %v781_v43  ;;  %v819_v37 = vld [vmem:[#allocation8 + $0x3b8] sm:$0xff]  ;;  %v821_v43 = vld [vmem:[#allocation8 + $0x3c8] sm:$0xff] }
  0xe0   :  { %v823_v44 = vld [vmem:[#allocation8 + $0x3d8] sm:$0xff] }
  0xe1   :  { %1258 = vmatpush1.bf16.msra.mxu1 %v1257_v54  ;;  %v1347_v54 = vpack.c.bf16 %v767_v53, %v765_v52  ;;  %v1367_v52 = vpack.c.bf16 %v787_v50, %v785_v49  ;;  %v784_v53 = vld [vmem:[#allocation8 + $0x2a0] sm:$0xff]  ;;  %v825_v49 = vld [vmem:[#allocation8 + $0x3e8] sm:$0xff]  ;;  %v827_v50 = vld [vmem:[#allocation8 + $0x3f8] sm:$0xff] }
  0xe2   :  { %1260 = vmatprep.subr.bf16.mxu1 %v1259_v58 }
  0xe3   :  { %1348 = vmatprep.subr.bf16.mxu0 %v1347_v54  ;;  %v786_v54 = vld [vmem:[#allocation8 + $0x2b0] sm:$0xff] }
  0xe5   :  { %1262 = vmatpush1.bf16.msra.mxu1 %v1261_v1 }
  0xe6   :  { %1264 = vmatprep.subr.bf16.mxu1 %v1263_v6 }
  0xe9   :  { %1266 = vmatpush1.bf16.msra.mxu1 %v1265_v15  ;;  %v769_v15 = vld [vmem:[#allocation8 + $0x228] sm:$0xff] }
  0xea   :  { %1268 = vmatprep.subr.bf16.mxu1 %v1267_v20  ;;  %v1351_v24 = vpack.c.bf16 %v771_v16, %v769_v15  ;;  %v807_v15 = vld [vmem:[#allocation8 + $0x358] sm:$0xff] }
  0xed   :  { %1270 = vmatpush1.bf16.msra.mxu1 %v1269_v28  ;;  %v773_v28 = vld [vmem:[#allocation8 + $0x248] sm:$0xff] }
  0xee   :  { %1272 = vmatprep.subr.bf16.mxu1 %v1271_v32  ;;  %v1353_v32 = vpack.c.bf16 %v770_v26, %v768_v25  ;;  %v1355_v33 = vpack.c.bf16 %v775_v29, %v773_v28  ;;  %v808_v28 = vld [vmem:[#allocation8 + $0x360] sm:$0xff]  ;;  %v810_v29 = vld [vmem:[#allocation8 + $0x370] sm:$0xff] }
  0xf1   :  { %1274 = vmatpush1.bf16.msra.mxu1 %v1273_v41  ;;  %v776_v41 = vld [vmem:[#allocation8 + $0x260] sm:$0xff] }
  0xf2   :  { %1276 = vmatprep.subr.bf16.mxu1 %v1275_v42  ;;  %v778_v42 = vld [vmem:[#allocation8 + $0x270] sm:$0xff] }
  0xf3   :  { %v1361_v45 = vpack.c.bf16 %v778_v42, %v776_v41  ;;  %v816_v41 = vld [vmem:[#allocation8 + $0x3a0] sm:$0xff]  ;;  %v818_v42 = vld [vmem:[#allocation8 + $0x3b0] sm:$0xff] }
  0xf5   :  { %1278 = vmatpush1.bf16.msra.mxu1 %v1277_v47  ;;  %v780_v47 = vld [vmem:[#allocation8 + $0x280] sm:$0xff] }
  0xf6   :  { %1280 = vmatprep.subr.bf16.mxu1 %v1279_v48  ;;  %v782_v48 = vld [vmem:[#allocation8 + $0x290] sm:$0xff] }
  0xf9   :  { %1282 = vmatpush1.bf16.msra.mxu1 %v1281_v51  ;;  %v1365_v51 = vpack.c.bf16 %v782_v48, %v780_v47  ;;  %v820_v47 = vld [vmem:[#allocation8 + $0x3c0] sm:$0xff]  ;;  %v822_v48 = vld [vmem:[#allocation8 + $0x3d0] sm:$0xff] }
  0xfc   :  { %620 = vmatmul.mubr.f32.vlgmr.msra.gmra.mrb[8].mxu1 %v1623_v2 }
  0xfd   :  { %625 = vmatprep.mubr.f32.mxu1 %v1625_v9 }
 0x100   :  { %626 = vmatmul.mubr.f32.gmra.mrb[10].mxu1 %v1629_v17 }
 0x14f   :  { %v390_v55 = vpop.f32.mrb[0].mxu1 }
 0x150   :  { %v1019_v56 = vmul.f32 -1.442695, %v390_v55  ;;  %v392_v57 = vpop.f32.mrb[1].mxu1 }
 0x151   :  { %v1020_v58 = vmul.f32 -1.442695, %v392_v57 }
 0x152   :  { %1423 = vpow2.f32 %v1019_v56  ;;  %v791_v56 = vld [vmem:[#allocation8 + $0x2d8] sm:$0xff] }
 0x153   :  { %1425 = vpow2.f32 %v1020_v58  ;;  %v396_v59 = vpop.f32.mrb[2].mxu1 }
 0x154   :  { %v1023_v60 = vmul.f32 -1.442695, %v396_v59  ;;  %v398_v61 = vpop.f32.mrb[3].mxu1 }
 0x155   :  { %v1024_v62 = vmul.f32 -1.442695, %v398_v61 }
 0x156   :  { %1427 = vpow2.f32 %v1023_v60  ;;  %v790_v60 = vld [vmem:[#allocation8 + $0x2d0] sm:$0xff] }
 0x157   :  { %1429 = vpow2.f32 %v1024_v62  ;;  %v795_v62 = vld [vmem:[#allocation8 + $0x2f8] sm:$0xff] }
 0x158   :  { %v544_v2 = vpop.f32.mrb[0].mxu0 }
 0x159   :  { %v546_v9 = vpop.f32.mrb[1].mxu0 }
 0x15c   :  { %v1424_v63 = vpop.eup %1423  ;;  %v550_v0 = vpop.f32.mrb[2].mxu0 }
 0x15d   :  { %v1426_v17 = vpop.eup %1425  ;;  %v656_v38 = vadd.f32 1.0, %v1424_v63  ;;  %v552_v3 = vpop.f32.mrb[3].mxu0  ;;  %v792_v63 = vld [vmem:[#allocation8 + $0x2e0] sm:$0xff] }
 0x15e   :  { %v657_v1 = vadd.f32 1.0, %v1426_v17  ;;  %v794_v17 = vld [vmem:[#allocation8 + $0x2f0] sm:$0xff] }
 0x15f   :  { %1431 = vrcp.f32 %v656_v38  ;;  %v797_v38 = vld [vmem:[#allocation8 + $0x308] sm:$0xff] }
 0x160   :  { %v1428_v4 = vpop.eup %1427  ;;  %1433 = vrcp.f32 %v657_v1  ;;  %v1377_v1 = vpack.c.bf16 %v794_v17, %v792_v63 }
 0x161   :  { %v1430_v5 = vpop.eup %1429  ;;  %v660_v6 = vadd.f32 1.0, %v1428_v4  ;;  %v796_v4 = vld [vmem:[#allocation8 + $0x300] sm:$0xff] }
 0x162   :  { %v661_v7 = vadd.f32 1.0, %v1430_v5  ;;  %v798_v5 = vld [vmem:[#allocation8 + $0x310] sm:$0xff] }
 0x163   :  { %1435 = vrcp.f32 %v660_v6  ;;  %v801_v6 = vld [vmem:[#allocation8 + $0x328] sm:$0xff] }
 0x164   :  { %1437 = vrcp.f32 %v661_v7  ;;  %v803_v7 = vld [vmem:[#allocation8 + $0x338] sm:$0xff] }
 0x169   :  { %v1432_v8 = vpop.eup %1431 }
 0x16a   :  { %v1434_v10 = vpop.eup %1433  ;;  %v680_v11 = vmul.f32 %v1432_v8, %v390_v55  ;;  %v789_v55 = vld [vmem:[#allocation8 + $0x2c8] sm:$0xff]  ;;  %v1381_v8 = vpack.c.bf16 %v798_v5, %v796_v4 }
 0x16b   :  { %v681_v14 = vmul.f32 %v1434_v10, %v392_v57  ;;  %v1369_v57 = vpack.c.bf16 %v786_v54, %v784_v53  ;;  %v1371_v58 = vpack.c.bf16 %v791_v56, %v789_v55  ;;  %v1383_v10 = vpack.c.bf16 %v803_v7, %v801_v6  ;;  %v824_v53 = vld [vmem:[#allocation8 + $0x3e0] sm:$0xff]  ;;  %v826_v54 = vld [vmem:[#allocation8 + $0x3f0] sm:$0xff] }
 0x16c   :  { %v688_v18 = vmul.f32 %v680_v11, %v544_v2  ;;  %v800_v11 = vld [vmem:[#allocation8 + $0x320] sm:$0xff]  ;;  %v1409_v55 = vpack.c.bf16 %v826_v54, %v824_v53 }
 0x16d   :  { %v1436_v19 = vpop.eup %1435  ;;  %v689_v20 = vmul.f32 %v681_v14, %v546_v9  ;;  %v805_v14 = vld [vmem:[#allocation8 + $0x348] sm:$0xff] }
 0x16e   :  { %v1438_v22 = vpop.eup %1437  ;;  %v684_v23 = vmul.f32 %v1436_v19, %v396_v59  ;;  %v788_v59 = vld [vmem:[#allocation8 + $0x2c0] sm:$0xff]  ;;  %v1387_v19 = vpack.c.bf16 %v807_v15, %v805_v14 }
 0x16f   :  { %892 = vmatprep.mubr.f32.mxu0 %v689_v20  ;;  %v685_v27 = vmul.f32 %v1438_v22, %v398_v61  ;;  %v793_v61 = vld [vmem:[#allocation8 + $0x2e8] sm:$0xff]  ;;  %v1373_v2 = vpack.c.bf16 %v790_v60, %v788_v59  ;;  %v804_v20 = vld [vmem:[#allocation8 + $0x340] sm:$0xff] }
 0x170   :  { %893 = vmatmul.mubr.f32.vlgmr.msra.gmra.mrb[4].mxu0 %v688_v18  ;;  %v692_v30 = vmul.f32 %v684_v23, %v550_v0  ;;  %v1375_v9 = vpack.c.bf16 %v795_v62, %v793_v61  ;;  %v799_v0 = vld [vmem:[#allocation8 + $0x318] sm:$0xff]  ;;  %v1385_v18 = vpack.c.bf16 %v802_v12, %v800_v11  ;;  %v809_v23 = vld [vmem:[#allocation8 + $0x368] sm:$0xff] }
 0x171   :  { %v693_v31 = vmul.f32 %v685_v27, %v552_v3  ;;  %1350 = vmatpush1.bf16.msra.mxu0 %v1349_v21  ;;  %v1379_v3 = vpack.c.bf16 %v799_v0, %v797_v38  ;;  %v806_v21 = vld [vmem:[#allocation8 + $0x350] sm:$0xff] }
 0x172   :  { %1352 = vmatprep.subr.bf16.mxu0 %v1351_v24  ;;  %v811_v24 = vld [vmem:[#allocation8 + $0x378] sm:$0xff]  ;;  %v1389_v26 = vpack.c.bf16 %v806_v21, %v804_v20 }
 0x173   :  { %898 = vmatprep.mubr.f32.mxu0 %v693_v31  ;;  %v1391_v27 = vpack.c.bf16 %v811_v24, %v809_v23  ;;  %v815_v31 = vld [vmem:[#allocation8 + $0x398] sm:$0xff] }
 0x174   :  { %899 = vmatmul.mubr.f32.gmra.mrb[6].mxu0 %v692_v30  ;;  %v813_v30 = vld [vmem:[#allocation8 + $0x388] sm:$0xff] }
 0x175   :  { %1354 = vmatpush1.bf16.msra.mxu0 %v1353_v32  ;;  %v1393_v32 = vpack.c.bf16 %v810_v29, %v808_v28 }
 0x176   :  { %1356 = vmatprep.subr.bf16.mxu0 %v1355_v33  ;;  %v1395_v33 = vpack.c.bf16 %v815_v31, %v813_v30 }
 0x179   :  { %1358 = vmatpush1.bf16.msra.mxu0 %v1357_v39  ;;  %v1397_v39 = vpack.c.bf16 %v814_v35, %v812_v34 }
 0x17a   :  { %1360 = vmatprep.subr.bf16.mxu0 %v1359_v40  ;;  %v1399_v40 = vpack.c.bf16 %v819_v37, %v817_v36 }
 0x17d   :  { %1362 = vmatpush1.bf16.msra.mxu0 %v1361_v45  ;;  %v1401_v45 = vpack.c.bf16 %v818_v42, %v816_v41 }
 0x17e   :  { %1364 = vmatprep.subr.bf16.mxu0 %v1363_v46  ;;  %v1403_v46 = vpack.c.bf16 %v823_v44, %v821_v43 }
 0x181   :  { %1366 = vmatpush1.bf16.msra.mxu0 %v1365_v51  ;;  %v1405_v51 = vpack.c.bf16 %v822_v48, %v820_v47 }
 0x182   :  { %1368 = vmatprep.subr.bf16.mxu0 %v1367_v52  ;;  %v1407_v52 = vpack.c.bf16 %v827_v50, %v825_v49 }
 0x185   :  { %1370 = vmatpush1.bf16.msra.mxu0 %v1369_v57 }
 0x186   :  { %1372 = vmatprep.subr.bf16.mxu0 %v1371_v58 }
 0x189   :  { %1374 = vmatpush1.bf16.msra.mxu0 %v1373_v2 }
 0x18a   :  { %1376 = vmatprep.subr.bf16.mxu0 %v1375_v9 }
 0x18d   :  { %1378 = vmatpush1.bf16.msra.mxu0 %v1377_v1 }
 0x18e   :  { %1380 = vmatprep.subr.bf16.mxu0 %v1379_v3 }
 0x18f   :  { %v1643_v13 = vpop.f32.mrb[4].mxu1 }
 0x190   :  { %v1645_v16 = vpop.f32.mrb[5].mxu1  ;;  %v1021_v56 = vmul.f32 -1.442695, %v1643_v13 }
 0x191   :  { %1382 = vmatpush1.bf16.msra.mxu0 %v1381_v8  ;;  %v1022_v57 = vmul.f32 -1.442695, %v1645_v16 }
 0x192   :  { %1384 = vmatprep.subr.bf16.mxu0 %v1383_v10  ;;  %1439 = vpow2.f32 %v1021_v56 }
 0x193   :  { %v1647_v22 = vpop.f32.mrb[6].mxu1  ;;  %1441 = vpow2.f32 %v1022_v57 }
 0x194   :  { %v1649_v25 = vpop.f32.mrb[7].mxu1  ;;  %v1025_v58 = vmul.f32 -1.442695, %v1647_v22 }
 0x195   :  { %1386 = vmatpush1.bf16.msra.mxu0 %v1385_v18  ;;  %v1026_v59 = vmul.f32 -1.442695, %v1649_v25 }
 0x196   :  { %1388 = vmatprep.subr.bf16.mxu0 %v1387_v19  ;;  %1443 = vpow2.f32 %v1025_v58 }
 0x197   :  { %1445 = vpow2.f32 %v1026_v59 }
 0x199   :  { %1390 = vmatpush1.bf16.msra.mxu0 %v1389_v26 }
 0x19a   :  { %1392 = vmatprep.subr.bf16.mxu0 %v1391_v27 }
 0x19c   :  { %v1440_v60 = vpop.eup %1439 }
 0x19d   :  { %1394 = vmatpush1.bf16.msra.mxu0 %v1393_v32  ;;  %v1442_v61 = vpop.eup %1441  ;;  %v658_v62 = vadd.f32 1.0, %v1440_v60 }
 0x19e   :  { %1396 = vmatprep.subr.bf16.mxu0 %v1395_v33  ;;  %v659_v9 = vadd.f32 1.0, %v1442_v61 }
 0x19f   :  { %1447 = vrcp.f32 %v658_v62 }
 0x1a0   :  { %v1444_v2 = vpop.eup %1443  ;;  %1449 = vrcp.f32 %v659_v9 }
 0x1a1   :  { %1398 = vmatpush1.bf16.msra.mxu0 %v1397_v39  ;;  %v1446_v63 = vpop.eup %1445  ;;  %v662_v17 = vadd.f32 1.0, %v1444_v2 }
 0x1a2   :  { %1400 = vmatprep.subr.bf16.mxu0 %v1399_v40  ;;  %v663_v38 = vadd.f32 1.0, %v1446_v63 }
 0x1a3   :  { %1451 = vrcp.f32 %v662_v17 }
 0x1a4   :  { %1453 = vrcp.f32 %v663_v38 }
 0x1a5   :  { %1402 = vmatpush1.bf16.msra.mxu0 %v1401_v45 }
 0x1a6   :  { %1404 = vmatprep.subr.bf16.mxu0 %v1403_v46 }
 0x1a9   :  { %1406 = vmatpush1.bf16.msra.mxu0 %v1405_v51  ;;  %v1448_v0 = vpop.eup %1447 }
 0x1aa   :  { %1408 = vmatprep.subr.bf16.mxu0 %v1407_v52  ;;  %v1450_v1 = vpop.eup %1449  ;;  %v682_v3 = vmul.f32 %v1448_v0, %v1643_v13 }
 0x1ab   :  { %v683_v5 = vmul.f32 %v1450_v1, %v1645_v16 }
 0x1ad   :  { %1410 = vmatpush1.bf16.msra.mxu0 %v1409_v55  ;;  %v1452_v4 = vpop.eup %1451 }
 0x1ae   :  { %v1454_v7 = vpop.eup %1453  ;;  %v686_v12 = vmul.f32 %v1452_v4, %v1647_v22 }
 0x1af   :  { %v687_v14 = vmul.f32 %v1454_v7, %v1649_v25 }
 0x1cf   :  { %v621_v6 = vpop.f32.mrb[8].mxu1 }
 0x1d0   :  { %v690_v8 = vmul.f32 %v682_v3, %v621_v6  ;;  %v623_v10 = vpop.f32.mrb[9].mxu1 }
 0x1d1   :  { %v691_v11 = vmul.f32 %v683_v5, %v623_v10 }
 0x1d3   :  { %v627_v15 = vpop.f32.mrb[10].mxu1  ;;  %969 = vmatprep.mubr.f32.mxu0 %v691_v11 }
 0x1d4   :  { %v694_v18 = vmul.f32 %v686_v12, %v627_v15  ;;  %v629_v19 = vpop.f32.mrb[11].mxu1  ;;  %970 = vmatmul.mubr.f32.vlgmr.msra.gmra.mrb[4].mxu0 %v690_v8 }
 0x1d5   :  { %v695_v20 = vmul.f32 %v687_v14, %v629_v19 }
 0x1d7   :  { %975 = vmatprep.mubr.f32.mxu0 %v695_v20 }
 0x1d8   :  { %976 = vmatmul.mubr.f32.gmra.mrb[6].mxu0 %v694_v18 }
 0x2a7   :  { %v971_v13 = vpop.f32.mrb[4].mxu0 }
 0x2a8   :  { %997 = vst [vmem:[#allocation9] sm:$0xff] %v971_v13  ;;  %v973_v16 = vpop.f32.mrb[5].mxu0 }
 0x2a9   :  { %998 = vst [vmem:[#allocation9 + $0x8] sm:$0xff] %v973_v16 }
 0x2ab   :  { %v977_v21 = vpop.f32.mrb[6].mxu0 }
 0x2ac   :  { %999 = vst [vmem:[#allocation9 + $0x10] sm:$0xff] %v977_v21  ;;  %v979_v22 = vpop.f32.mrb[7].mxu0 }
 0x2ad   :  { %1000 = vst [vmem:[#allocation9 + $0x18] sm:$0xff] %v979_v22 }
 0x2ae   :  { %1532 = shalt.err (!%p1529_p0)
}
 0x2af   :  { %s1533_s27 = scalar_lea.hbm %s1677_s3, 512 }
 0x2b0   :  { %p1534_p1 = scmp.ne.s32.totalorder %s1677_s3, %s1533_s27  ;;  %p1537_p2 = scmp.lt.u32.totalorder %s1533_s27, %s1677_s3 }
 0x2b2   :  { %p1539_p3 = pnand %p1537_p2, %p1534_p1 }
 0x2b4   :  { %1542 = shalt.err (!%p1539_p3)
}
 0x2b5   :  { %1012 = dma.vmem_to_hbm [thread:$0]  %s1007_s23, 512, %s1677_s3, [#allocation5], %s1553_s1, %s1553_s1, %s1554_s9  }
 0x2b6   :  { %1547 = dma.done.wait [#allocation5], 512  }
 0x2b7   :  { %1548 = vsyncadd [#allocation5], 4294966784 }
 0x2b8   :  { %1016 = vsyncpa [#allocation4], 1 }
 0x2b9   :  { %1017 = vsyncpa [#allocation7], 1 }
 0x2ba   :  { %1018 = vsyncpa [#allocation5], 1 }

</bundles_post_ra>
